<compile_context>
chip_gen: v5e
topology: v5e:2x2
jax: 0.10.0
libtpu: 0.0.40
codegen_flags: <defaults>
</compile_context>

<pallas_src>
import functools

import jax
import jax.numpy as jnp
from jax.experimental import pallas as pl
from jax.experimental.pallas import tpu as pltpu


# ---------------------------------------------------------------------------
# Small helpers
# ---------------------------------------------------------------------------

def _round_up(x, m):
    return ((x + m - 1) // m) * m


def _row_tile(T, cap=512):
    # Row tile: multiple of 8 sublanes, capped so big T still pipelines.
    return min(cap, _round_up(T, 8))


def _batch_tile(B, S, D):
    # Amortize per-grid-step overhead when per-element work is tiny, but keep
    # at least 2 grid steps (megacore sharding on v7x) when B allows it.
    if B <= 2 or S * D >= 64 * 1024:
        return 1
    bt = min(8, max(1, B // 2))
    while B % bt:
        bt -= 1
    return max(bt, 1)


def _ln(x, g, b, eps=1e-5):
    x = x.astype(jnp.float32)
    mean = jnp.mean(x, axis=-1, keepdims=True)
    var = jnp.mean((x - mean) ** 2, axis=-1, keepdims=True)
    return (x - mean) * jax.lax.rsqrt(var + eps) * g + b


def _bf16(x):
    return x.astype(jnp.bfloat16)


# ---------------------------------------------------------------------------
# Pallas kernels
# ---------------------------------------------------------------------------

def _linear_kernel(x_ref, w_ref, b_ref, o_ref):
    y = jnp.dot(_bf16(x_ref[...]), w_ref[...],
                preferred_element_type=jnp.float32) + b_ref[...]
    o_ref[...] = y.astype(o_ref.dtype)


def _linear_ln_kernel(x_ref, w_ref, b_ref, g_ref, beta_ref, o_ref):
    # gnn2transformer Linear fused with the input LayerNorm.
    y = jnp.dot(_bf16(x_ref[...]), w_ref[...],
                preferred_element_type=jnp.float32) + b_ref[...]
    o_ref[...] = _ln(y, g_ref[...], beta_ref[...]).astype(o_ref.dtype)


def _ln_linear_kernel(x_ref, g_ref, beta_ref, w_ref, b_ref, o_ref):
    # Final encoder LayerNorm fused with the (lane-dense, 128-padded) output
    # Linear.
    h = _ln(x_ref[...], g_ref[...], beta_ref[...])
    y = jnp.dot(_bf16(h), w_ref[...],
                preferred_element_type=jnp.float32) + b_ref[...]
    o_ref[...] = y.astype(o_ref.dtype)


def _encoder_layer_kernel(x_ref,
                          wq_ref, wk_ref, wv_ref,
                          bq_ref, bk_ref, bv_ref,
                          wo_ref, bo_ref,
                          ln1g_ref, ln1b_ref,
                          w1_ref, b1_ref, w2_ref, b2_ref,
                          ln2g_ref, ln2b_ref,
                          o_ref, *, n_head, scale, batch_tile):
    """One full TransformerEncoderLayer for `batch_tile` batch elements."""
    H = n_head
    # TODO(synk): flash-style KV tiling (online softmax) needed once S grows
    # past ~1k on v7x (64 MiB VMEM); full (H,S,S) scores are fine at small S.
    for b in range(batch_tile):                       # static, tiny unroll
        x = x_ref[b].astype(jnp.float32)              # (S, D)
        S, D = x.shape

        # --- self-attention (head-batched, bf16 MXU operands) -------------
        xh = jnp.broadcast_to(_bf16(x)[None], (H, S, D))      # (H, S, D)

        q = jnp.einsum('hsd,hde->hse', xh, wq_ref[...],
                       preferred_element_type=jnp.float32) + bq_ref[...]
        k = jnp.einsum('hsd,hde->hse', xh, wk_ref[...],
                       preferred_element_type=jnp.float32) + bk_ref[...]
        v = jnp.einsum('hsd,hde->hse', xh, wv_ref[...],
                       preferred_element_type=jnp.float32) + bv_ref[...]
        q = q * scale                                          # (H, S, Dh)

        s = jnp.einsum('hqe,hke->hqk', _bf16(q), _bf16(k),
                       preferred_element_type=jnp.float32)     # (H, S, S)
        m = jnp.max(s, axis=-1, keepdims=True)
        p = jnp.exp(s - m)                                     # f32 softmax
        p = p * pl.reciprocal(jnp.sum(p, axis=-1, keepdims=True), approx=True)

        o_h = jnp.einsum('hqk,hke->hqe', _bf16(p), _bf16(v),
                         preferred_element_type=jnp.float32)   # (H, S, Dh)

        # out-projection: batched (H,S,Dh)@(H,Dh,D) then reduce over heads;
        # equivalent to concat_h(o_h) @ W_o, with no lane-axis relayout.
        a = jnp.einsum('hse,hed->hsd', _bf16(o_h), wo_ref[...],
                       preferred_element_type=jnp.float32).sum(axis=0)
        a = a + bo_ref[...]                                    # (S, D)

        h1 = _ln(x + a, ln1g_ref[...], ln1b_ref[...])          # post-norm 1

        # --- feed-forward block -------------------------------------------
        f = jnp.dot(_bf16(h1), w1_ref[...],
                    preferred_element_type=jnp.float32) + b1_ref[...]
        f = jnp.maximum(f, 0.0)
        f = jnp.dot(_bf16(f), w2_ref[...],
                    preferred_element_type=jnp.float32) + b2_ref[...]
        out = _ln(h1 + f, ln2g_ref[...], ln2b_ref[...])        # post-norm 2

        o_ref[b] = out.astype(o_ref.dtype)


# ---------------------------------------------------------------------------
# Pallas wrappers
# ---------------------------------------------------------------------------

def _rowwise_call(kernel, x, extra_args, extra_shapes, out_dim):
    """Row-tiled launch of a token-wise fused kernel on a (T, C) slab."""
    T, C = x.shape
    TM = _row_tile(T)
    grid = (pl.cdiv(T, TM),)
    rep = lambda shape: pl.BlockSpec(shape, lambda i: (0,) * len(shape))
    return pl.pallas_call(
        kernel,
        out_shape=jax.ShapeDtypeStruct((T, out_dim), x.dtype),
        grid=grid,
        in_specs=[pl.BlockSpec((TM, C), lambda i: (i, 0))]
                 + [rep(s) for s in extra_shapes],
        out_specs=pl.BlockSpec((TM, out_dim), lambda i: (i, 0)),
        compiler_params=pltpu.CompilerParams(
            dimension_semantics=("parallel",)),
    )(x, *extra_args)


def linear(x, w, b):
    N = w.shape[1]
    return _rowwise_call(_linear_kernel, x,
                         (w.astype(jnp.bfloat16), b.reshape(1, N)),
                         (w.shape, (1, N)), N)


def linear_ln(x, w, b, g, beta):
    N = w.shape[1]
    return _rowwise_call(_linear_ln_kernel, x,
                         (w.astype(jnp.bfloat16), b.reshape(1, N),
                          g.reshape(1, N), beta.reshape(1, N)),
                         (w.shape, (1, N), (1, N), (1, N)), N)


def ln_linear(x, g, beta, w, b):
    # Lane-dense output: pad the (tiny) output channel dim to a full 128-lane
    # slab inside the kernel (unmasked vst), slice back in XLA.
    D = x.shape[1]
    N = w.shape[1]
    Np = max(128, _round_up(N, 128))
    w_p = jnp.zeros((D, Np), jnp.float32).at[:, :N].set(w).astype(jnp.bfloat16)
    b_p = jnp.zeros((1, Np), jnp.float32).at[0, :N].set(b)
    out = _rowwise_call(_ln_linear_kernel, x,
                        (g.reshape(1, D), beta.reshape(1, D), w_p, b_p),
                        ((1, D), (1, D), (D, Np), (1, Np)), Np)
    return out[:, :N]


def encoder_layer(h, lp, n_head):
    """h: (B, S, D) -> (B, S, D); one fused pallas_call, grid over batch."""
    B, S, D = h.shape
    F = lp['w1'].shape[1]
    assert D % n_head == 0, "d_model must be divisible by n_head"
    Dh = D // n_head
    Bt = _batch_tile(B, S, D)
    scale = 1.0 / float(Dh) ** 0.5

    # Split the packed [Q|K|V] column blocks of w_qkv into head-batched
    # (H, D, Dh) weights (weight-sized XLA ops, done once per call).
    # NOTE: PyTorch's in_proj_weight is (3D, D) row-packed; importing real
    # weights requires a transpose so columns here are [Q|K|V], head-major.
    def _heads_cols(w):  # (D, D) -> (H, D, Dh)
        return jnp.transpose(w.reshape(D, n_head, Dh), (1, 0, 2))

    wq = _bf16(_heads_cols(lp['w_qkv'][:, 0 * D:1 * D]))
    wk = _bf16(_heads_cols(lp['w_qkv'][:, 1 * D:2 * D]))
    wv = _bf16(_heads_cols(lp['w_qkv'][:, 2 * D:3 * D]))
    bq = lp['b_qkv'][0 * D:1 * D].reshape(n_head, 1, Dh)
    bk = lp['b_qkv'][1 * D:2 * D].reshape(n_head, 1, Dh)
    bv = lp['b_qkv'][2 * D:3 * D].reshape(n_head, 1, Dh)
    wo = _bf16(lp['w_o'].reshape(n_head, Dh, D))
    w1 = _bf16(lp['w1'])
    w2 = _bf16(lp['w2'])

    x_spec = pl.BlockSpec((Bt, S, D), lambda i: (i, 0, 0))
    rep = lambda shape: pl.BlockSpec(shape, lambda i: (0,) * len(shape))
    # TODO(synk): mark invariant weight specs pipeline_mode=pl.Buffered(1) to
    # halve their VMEM footprint once single-buffering is validated.

    # Rough VMEM need (default double-buffered blocks) + headroom; v5e's
    # default scoped limit is only 16 MiB.
    blk = (2 * (3 * n_head * D * Dh + n_head * Dh * D + D * F + F * D)  # bf16 W
           + 4 * (3 * n_head * Dh + 6 * D + F)                          # f32 b/LN
           + 4 * 2 * Bt * S * D)                                        # in/out
    inter = 4 * Bt * (n_head * S * (S + 3 * Dh + 2 * D) + S * (2 * F + 4 * D))
    vmem_limit = int(min(64 * 1024 * 1024,
                         max(32 * 1024 * 1024, 2 * blk + 2 * inter)))

    return pl.pallas_call(
        functools.partial(_encoder_layer_kernel, n_head=n_head, scale=scale,
                          batch_tile=Bt),
        out_shape=jax.ShapeDtypeStruct((B, S, D), h.dtype),
        grid=(B // Bt,),
        in_specs=[
            x_spec,
            rep((n_head, D, Dh)), rep((n_head, D, Dh)), rep((n_head, D, Dh)),
            rep((n_head, 1, Dh)), rep((n_head, 1, Dh)), rep((n_head, 1, Dh)),
            rep((n_head, Dh, D)), rep((1, D)),          # out projection
            rep((1, D)), rep((1, D)),                   # layernorm 1
            rep((D, F)), rep((1, F)),                   # linear1
            rep((F, D)), rep((1, D)),                   # linear2
            rep((1, D)), rep((1, D)),                   # layernorm 2
        ],
        out_specs=x_spec,
        input_output_aliases={0: 0},                    # update h in place
        compiler_params=pltpu.CompilerParams(
            dimension_semantics=("parallel",),
            vmem_limit_bytes=vmem_limit),
    )(h,
      wq, wk, wv, bq, bk, bv,
      wo, lp['b_o'].reshape(1, D),
      lp['ln1_g'].reshape(1, D), lp['ln1_b'].reshape(1, D),
      w1, lp['b1'].reshape(1, F),
      w2, lp['b2'].reshape(1, D),
      lp['ln2_g'].reshape(1, D), lp['ln2_b'].reshape(1, D))


# ---------------------------------------------------------------------------
# Model (parameter setup + minimal glue in plain JAX, hot paths in Pallas)
# ---------------------------------------------------------------------------

def init_params(key, input_channels, d_model, out_channels,
                num_layers, n_head, dim_feedforward):
    def dense(k, fan_in, fan_out):
        kw, kb = jax.random.split(k)
        lim = (6.0 / (fan_in + fan_out)) ** 0.5
        w = jax.random.uniform(kw, (fan_in, fan_out), jnp.float32, -lim, lim)
        b = 0.01 * jax.random.normal(kb, (fan_out,), jnp.float32)
        return w, b

    keys = jax.random.split(key, 3 + num_layers)
    p = {}
    p['w_in'], p['b_in'] = dense(keys[0], input_channels, d_model)
    p['ln_in_g'] = jnp.ones((d_model,), jnp.float32)
    p['ln_in_b'] = jnp.zeros((d_model,), jnp.float32)

    layers = []
    for li in range(num_layers):
        lk = jax.random.split(keys[1 + li], 4)
        lp = {}
        # w_qkv columns are packed [Q|K|V], head-major within each block.
        lp['w_qkv'], lp['b_qkv'] = dense(lk[0], d_model, 3 * d_model)
        lp['w_o'], lp['b_o'] = dense(lk[1], d_model, d_model)
        lp['w1'], lp['b1'] = dense(lk[2], d_model, dim_feedforward)
        lp['w2'], lp['b2'] = dense(lk[3], dim_feedforward, d_model)
        lp['ln1_g'] = jnp.ones((d_model,), jnp.float32)
        lp['ln1_b'] = jnp.zeros((d_model,), jnp.float32)
        lp['ln2_g'] = jnp.ones((d_model,), jnp.float32)
        lp['ln2_b'] = jnp.zeros((d_model,), jnp.float32)
        layers.append(lp)
    p['layers'] = layers

    p['ln_f_g'] = jnp.ones((d_model,), jnp.float32)
    p['ln_f_b'] = jnp.zeros((d_model,), jnp.float32)
    p['w_out'], p['b_out'] = dense(keys[1 + num_layers], d_model, out_channels)
    return p


def transformer_forward(x, params, n_head, norm_input=True):
    """x: (seq, batch, feature) -> (seq, batch, out_channels)"""
    S, B, C = x.shape
    D = params['w_in'].shape[1]

    # Single tiny transpose of the raw C_in-channel input so all per-layer
    # kernels can block cleanly over the batch axis (no per-layer transposes).
    xb = jnp.transpose(x, (1, 0, 2)).reshape(B * S, C)     # batch-major tokens

    if norm_input:
        h = linear_ln(xb, params['w_in'], params['b_in'],
                      params['ln_in_g'], params['ln_in_b'])
    else:
        h = linear(xb, params['w_in'], params['b_in'])

    h = h.reshape(B, S, D)
    for lp in params['layers']:
        h = encoder_layer(h, lp, n_head)

    out = ln_linear(h.reshape(B * S, D),
                    params['ln_f_g'], params['ln_f_b'],
                    params['w_out'], params['b_out'])
    out = out.reshape(B, S, -1)
    return jnp.transpose(out, (1, 0, 2))                   # back to (S, B, C_out)


# ---------------------------------------------------------------------------

if __name__ == "__main__":
    # Small config consistent with the module's constructor.
    seq, batch = 8, 2
    input_channels, d_model, out_channels = 4, 32, 4
    num_layers, n_head, dim_feedforward = 2, 4, 64
    # TODO(synk): dropout omitted (inference semantics); training-mode dropout
    # would need pltpu.prng_* inside the fused kernels.

    key = jax.random.PRNGKey(0)
    kx, kp = jax.random.split(key)
    x = jax.random.normal(kx, (seq, batch, input_channels), jnp.float32)
    params = init_params(kp, input_channels, d_model, out_channels,
                         num_layers, n_head, dim_feedforward)

    fwd = jax.jit(functools.partial(transformer_forward, n_head=n_head,
                                    norm_input=True))
    out = fwd(x, params)
    jax.block_until_ready(out)
    assert out.shape == (seq, batch, out_channels)
    assert bool(jnp.all(jnp.isfinite(out)))
    print("KERNEL_OK")
</pallas_src>

<mosaic_0001>
module attributes {stable_mosaic.version = 11 : i64} {
  func.func @_linear_ln_kernel(%arg0: i32, %arg1: memref<16x4xf32, #tpu.memory_space<vmem>>, %arg2: memref<4x32xbf16, #tpu.memory_space<vmem>>, %arg3: memref<1x32xf32, #tpu.memory_space<vmem>>, %arg4: memref<1x32xf32, #tpu.memory_space<vmem>>, %arg5: memref<1x32xf32, #tpu.memory_space<vmem>>, %arg6: memref<16x32xf32, #tpu.memory_space<vmem>>) attributes {dimension_semantics = [#tpu.dimension_semantics<parallel>], iteration_bounds = array<i64: 1>, scalar_prefetch = 0 : i64, scratch_operands = 0 : i64, tpu.core_type = #tpu.core_type<tc>, window_params = [{transform_indices = @transform_0, window_bounds = array<i64: 16, 4>}, {pipeline_mode = #tpu.pipeline_mode<synchronous>, transform_indices = @transform_1, window_bounds = array<i64: 4, 32>}, {pipeline_mode = #tpu.pipeline_mode<synchronous>, transform_indices = @transform_2, window_bounds = array<i64: 1, 32>}, {pipeline_mode = #tpu.pipeline_mode<synchronous>, transform_indices = @transform_3, window_bounds = array<i64: 1, 32>}, {pipeline_mode = #tpu.pipeline_mode<synchronous>, transform_indices = @transform_4, window_bounds = array<i64: 1, 32>}, {transform_indices = @transform_5, window_bounds = array<i64: 16, 32>}]} {
    %c0 = arith.constant 0 : index
    %c0_0 = arith.constant 0 : index
    %0 = vector.load %arg1[%c0, %c0_0] : memref<16x4xf32, #tpu.memory_space<vmem>>, vector<16x4xf32>
    %1 = arith.truncf %0 : vector<16x4xf32> to vector<16x4xbf16>
    %c0_1 = arith.constant 0 : index
    %c0_2 = arith.constant 0 : index
    %2 = vector.load %arg2[%c0_1, %c0_2] : memref<4x32xbf16, #tpu.memory_space<vmem>>, vector<4x32xbf16>
    %cst = arith.constant dense<0.000000e+00> : vector<16x32xf32>
    %3 = tpu.matmul %1, %2, %cst {dimension_numbers = #tpu.dot_dimension_numbers<[1], [0], [0], [1], [0, 0, 1, 1], [], []>} : vector<16x4xbf16>, vector<4x32xbf16>, vector<16x32xf32> -> vector<16x32xf32>
    %c0_3 = arith.constant 0 : index
    %c0_4 = arith.constant 0 : index
    %4 = vector.load %arg3[%c0_3, %c0_4] : memref<1x32xf32, #tpu.memory_space<vmem>>, vector<1x32xf32>
    %5 = vector.broadcast %4 : vector<1x32xf32> to vector<16x32xf32>
    %6 = arith.addf %3, %5 : vector<16x32xf32>
    %c0_5 = arith.constant 0 : index
    %c0_6 = arith.constant 0 : index
    %7 = vector.load %arg4[%c0_5, %c0_6] : memref<1x32xf32, #tpu.memory_space<vmem>>, vector<1x32xf32>
    %c0_7 = arith.constant 0 : index
    %c0_8 = arith.constant 0 : index
    %8 = vector.load %arg5[%c0_7, %c0_8] : memref<1x32xf32, #tpu.memory_space<vmem>>, vector<1x32xf32>
    %cst_9 = arith.constant dense<0.000000e+00> : vector<16xf32>
    %9 = vector.multi_reduction <add>, %6, %cst_9 [1] : vector<16x32xf32> to vector<16xf32>
    %10 = vector.shape_cast %9 : vector<16xf32> to vector<16x1xf32>
    %cst_10 = arith.constant 3.200000e+01 : f32
    %11 = vector.broadcast %cst_10 : f32 to vector<16x1xf32>
    %12 = arith.divf %10, %11 : vector<16x1xf32>
    %13 = vector.broadcast %12 : vector<16x1xf32> to vector<16x32xf32>
    %14 = arith.subf %6, %13 : vector<16x32xf32>
    %15 = arith.mulf %14, %14 : vector<16x32xf32>
    %cst_11 = arith.constant dense<0.000000e+00> : vector<16xf32>
    %16 = vector.multi_reduction <add>, %15, %cst_11 [1] : vector<16x32xf32> to vector<16xf32>
    %17 = vector.shape_cast %16 : vector<16xf32> to vector<16x1xf32>
    %cst_12 = arith.constant 3.200000e+01 : f32
    %18 = vector.broadcast %cst_12 : f32 to vector<16x1xf32>
    %19 = arith.divf %17, %18 : vector<16x1xf32>
    %20 = vector.broadcast %12 : vector<16x1xf32> to vector<16x32xf32>
    %21 = arith.subf %6, %20 : vector<16x32xf32>
    %cst_13 = arith.constant 9.99999974E-6 : f32
    %22 = vector.broadcast %cst_13 : f32 to vector<16x1xf32>
    %23 = arith.addf %19, %22 : vector<16x1xf32>
    %24 = math.rsqrt %23 : vector<16x1xf32>
    %25 = vector.broadcast %24 : vector<16x1xf32> to vector<16x32xf32>
    %26 = arith.mulf %21, %25 : vector<16x32xf32>
    %27 = vector.broadcast %7 : vector<1x32xf32> to vector<16x32xf32>
    %28 = arith.mulf %26, %27 : vector<16x32xf32>
    %29 = vector.broadcast %8 : vector<1x32xf32> to vector<16x32xf32>
    %30 = arith.addf %28, %29 : vector<16x32xf32>
    %c0_14 = arith.constant 0 : index
    %c0_15 = arith.constant 0 : index
    %31 = vector.load %arg6[%c0_14, %c0_15] : memref<16x32xf32, #tpu.memory_space<vmem>>, vector<16x32xf32>
    tpu.vector_store %arg6[%c0_14, %c0_15], %30 {strides = array<i32>} : memref<16x32xf32, #tpu.memory_space<vmem>>, vector<16x32xf32>,
    return
  }
  func.func @transform_0(%arg0: i32) -> (i32, i32) {
    %c0_i32 = arith.constant 0 : i32
    %c0_i32_0 = arith.constant 0 : i32
    return %arg0, %c0_i32 : i32, i32
  }
  func.func @transform_1(%arg0: i32) -> (i32, i32) {
    %c0_i32 = arith.constant 0 : i32
    %c0_i32_0 = arith.constant 0 : i32
    %c0_i32_1 = arith.constant 0 : i32
    return %c0_i32, %c0_i32_0 : i32, i32
  }
  func.func @transform_2(%arg0: i32) -> (i32, i32) {
    %c0_i32 = arith.constant 0 : i32
    %c0_i32_0 = arith.constant 0 : i32
    %c0_i32_1 = arith.constant 0 : i32
    return %c0_i32, %c0_i32_0 : i32, i32
  }
  func.func @transform_3(%arg0: i32) -> (i32, i32) {
    %c0_i32 = arith.constant 0 : i32
    %c0_i32_0 = arith.constant 0 : i32
    %c0_i32_1 = arith.constant 0 : i32
    return %c0_i32, %c0_i32_0 : i32, i32
  }
  func.func @transform_4(%arg0: i32) -> (i32, i32) {
    %c0_i32 = arith.constant 0 : i32
    %c0_i32_0 = arith.constant 0 : i32
    %c0_i32_1 = arith.constant 0 : i32
    return %c0_i32, %c0_i32_0 : i32, i32
  }
  func.func @transform_5(%arg0: i32) -> (i32, i32) {
    %c0_i32 = arith.constant 0 : i32
    %c0_i32_0 = arith.constant 0 : i32
    return %arg0, %c0_i32 : i32, i32
  }
}

module attributes {stable_mosaic.version = 11 : i64} {
  func.func @_encoder_layer_kernel(%arg0: i32, %arg1: memref<1x8x32xf32, #tpu.memory_space<vmem>>, %arg2: memref<4x32x8xbf16, #tpu.memory_space<vmem>>, %arg3: memref<4x32x8xbf16, #tpu.memory_space<vmem>>, %arg4: memref<4x32x8xbf16, #tpu.memory_space<vmem>>, %arg5: memref<4x1x8xf32, #tpu.memory_space<vmem>>, %arg6: memref<4x1x8xf32, #tpu.memory_space<vmem>>, %arg7: memref<4x1x8xf32, #tpu.memory_space<vmem>>, %arg8: memref<4x8x32xbf16, #tpu.memory_space<vmem>>, %arg9: memref<1x32xf32, #tpu.memory_space<vmem>>, %arg10: memref<1x32xf32, #tpu.memory_space<vmem>>, %arg11: memref<1x32xf32, #tpu.memory_space<vmem>>, %arg12: memref<32x64xbf16, #tpu.memory_space<vmem>>, %arg13: memref<1x64xf32, #tpu.memory_space<vmem>>, %arg14: memref<64x32xbf16, #tpu.memory_space<vmem>>, %arg15: memref<1x32xf32, #tpu.memory_space<vmem>>, %arg16: memref<1x32xf32, #tpu.memory_space<vmem>>, %arg17: memref<1x32xf32, #tpu.memory_space<vmem>>, %arg18: memref<1x8x32xf32, #tpu.memory_space<vmem>>) attributes {dimension_semantics = [#tpu.dimension_semantics<parallel>], iteration_bounds = array<i64: 2>, scalar_prefetch = 0 : i64, scratch_operands = 0 : i64, tpu.core_type = #tpu.core_type<tc>, window_params = [{transform_indices = @transform_0, window_bounds = array<i64: 1, 8, 32>}, {pipeline_mode = #tpu.pipeline_mode<synchronous>, transform_indices = @transform_1, window_bounds = array<i64: 4, 32, 8>}, {pipeline_mode = #tpu.pipeline_mode<synchronous>, transform_indices = @transform_2, window_bounds = array<i64: 4, 32, 8>}, {pipeline_mode = #tpu.pipeline_mode<synchronous>, transform_indices = @transform_3, window_bounds = array<i64: 4, 32, 8>}, {pipeline_mode = #tpu.pipeline_mode<synchronous>, transform_indices = @transform_4, window_bounds = array<i64: 4, 1, 8>}, {pipeline_mode = #tpu.pipeline_mode<synchronous>, transform_indices = @transform_5, window_bounds = array<i64: 4, 1, 8>}, {pipeline_mode = #tpu.pipeline_mode<synchronous>, transform_indices = @transform_6, window_bounds = array<i64: 4, 1, 8>}, {pipeline_mode = #tpu.pipeline_mode<synchronous>, transform_indices = @transform_7, window_bounds = array<i64: 4, 8, 32>}, {pipeline_mode = #tpu.pipeline_mode<synchronous>, transform_indices = @transform_8, window_bounds = array<i64: 1, 32>}, {pipeline_mode = #tpu.pipeline_mode<synchronous>, transform_indices = @transform_9, window_bounds = array<i64: 1, 32>}, {pipeline_mode = #tpu.pipeline_mode<synchronous>, transform_indices = @transform_10, window_bounds = array<i64: 1, 32>}, {pipeline_mode = #tpu.pipeline_mode<synchronous>, transform_indices = @transform_11, window_bounds = array<i64: 32, 64>}, {pipeline_mode = #tpu.pipeline_mode<synchronous>, transform_indices = @transform_12, window_bounds = array<i64: 1, 64>}, {pipeline_mode = #tpu.pipeline_mode<synchronous>, transform_indices = @transform_13, window_bounds = array<i64: 64, 32>}, {pipeline_mode = #tpu.pipeline_mode<synchronous>, transform_indices = @transform_14, window_bounds = array<i64: 1, 32>}, {pipeline_mode = #tpu.pipeline_mode<synchronous>, transform_indices = @transform_15, window_bounds = array<i64: 1, 32>}, {pipeline_mode = #tpu.pipeline_mode<synchronous>, transform_indices = @transform_16, window_bounds = array<i64: 1, 32>}, {transform_indices = @transform_17, window_bounds = array<i64: 1, 8, 32>}]} {
    %c0 = arith.constant 0 : index
    %c0_0 = arith.constant 0 : index
    %c0_1 = arith.constant 0 : index
    %0 = vector.load %arg1[%c0, %c0_0, %c0_1] : memref<1x8x32xf32, #tpu.memory_space<vmem>>, vector<1x8x32xf32>
    %1 = vector.shape_cast %0 : vector<1x8x32xf32> to vector<8x32xf32>
    %2 = arith.truncf %1 : vector<8x32xf32> to vector<8x32xbf16>
    %3 = vector.shape_cast %2 : vector<8x32xbf16> to vector<1x8x32xbf16>
    %4 = vector.shape_cast %3 : vector<1x8x32xbf16> to vector<1x8x32xbf16>
    %5 = vector.broadcast %4 : vector<1x8x32xbf16> to vector<4x8x32xbf16>
    %c0_2 = arith.constant 0 : index
    %c0_3 = arith.constant 0 : index
    %c0_4 = arith.constant 0 : index
    %6 = vector.load %arg2[%c0_2, %c0_3, %c0_4] : memref<4x32x8xbf16, #tpu.memory_space<vmem>>, vector<4x32x8xbf16>
    "tpu.trace_start"() <{level = 10 : i32, message = "hsd,hde->hse"}> : () -> ()
    %cst = arith.constant dense<0.000000e+00> : vector<4x8x8xf32>
    %7 = tpu.matmul %5, %6, %cst {dimension_numbers = #tpu.dot_dimension_numbers<[2], [1], [1], [2], [0, 0, 0, 1, 1, 2], [0], [0]>} : vector<4x8x32xbf16>, vector<4x32x8xbf16>, vector<4x8x8xf32> -> vector<4x8x8xf32>
    "tpu.trace_stop"() : () -> ()
    %c0_5 = arith.constant 0 : index
    %c0_6 = arith.constant 0 : index
    %c0_7 = arith.constant 0 : index
    %8 = vector.load %arg5[%c0_5, %c0_6, %c0_7] : memref<4x1x8xf32, #tpu.memory_space<vmem>>, vector<4x1x8xf32>
    %9 = vector.broadcast %8 : vector<4x1x8xf32> to vector<4x8x8xf32>
    %10 = arith.addf %7, %9 : vector<4x8x8xf32>
    %c0_8 = arith.constant 0 : index
    %c0_9 = arith.constant 0 : index
    %c0_10 = arith.constant 0 : index
    %11 = vector.load %arg3[%c0_8, %c0_9, %c0_10] : memref<4x32x8xbf16, #tpu.memory_space<vmem>>, vector<4x32x8xbf16>
    "tpu.trace_start"() <{level = 10 : i32, message = "hsd,hde->hse"}> : () -> ()
    %cst_11 = arith.constant dense<0.000000e+00> : vector<4x8x8xf32>
    %12 = tpu.matmul %5, %11, %cst_11 {dimension_numbers = #tpu.dot_dimension_numbers<[2], [1], [1], [2], [0, 0, 0, 1, 1, 2], [0], [0]>} : vector<4x8x32xbf16>, vector<4x32x8xbf16>, vector<4x8x8xf32> -> vector<4x8x8xf32>
    "tpu.trace_stop"() : () -> ()
    %c0_12 = arith.constant 0 : index
    %c0_13 = arith.constant 0 : index
    %c0_14 = arith.constant 0 : index
    %13 = vector.load %arg6[%c0_12, %c0_13, %c0_14] : memref<4x1x8xf32, #tpu.memory_space<vmem>>, vector<4x1x8xf32>
    %14 = vector.broadcast %13 : vector<4x1x8xf32> to vector<4x8x8xf32>
    %15 = arith.addf %12, %14 : vector<4x8x8xf32>
    %c0_15 = arith.constant 0 : index
    %c0_16 = arith.constant 0 : index
    %c0_17 = arith.constant 0 : index
    %16 = vector.load %arg4[%c0_15, %c0_16, %c0_17] : memref<4x32x8xbf16, #tpu.memory_space<vmem>>, vector<4x32x8xbf16>
    "tpu.trace_start"() <{level = 10 : i32, message = "hsd,hde->hse"}> : () -> ()
    %cst_18 = arith.constant dense<0.000000e+00> : vector<4x8x8xf32>
    %17 = tpu.matmul %5, %16, %cst_18 {dimension_numbers = #tpu.dot_dimension_numbers<[2], [1], [1], [2], [0, 0, 0, 1, 1, 2], [0], [0]>} : vector<4x8x32xbf16>, vector<4x32x8xbf16>, vector<4x8x8xf32> -> vector<4x8x8xf32>
    "tpu.trace_stop"() : () -> ()
    %c0_19 = arith.constant 0 : index
    %c0_20 = arith.constant 0 : index
    %c0_21 = arith.constant 0 : index
    %18 = vector.load %arg7[%c0_19, %c0_20, %c0_21] : memref<4x1x8xf32, #tpu.memory_space<vmem>>, vector<4x1x8xf32>
    %19 = vector.broadcast %18 : vector<4x1x8xf32> to vector<4x8x8xf32>
    %20 = arith.addf %17, %19 : vector<4x8x8xf32>
    %cst_22 = arith.constant 0.353553385 : f32
    %21 = vector.broadcast %cst_22 : f32 to vector<4x8x8xf32>
    %22 = arith.mulf %10, %21 : vector<4x8x8xf32>
    %23 = arith.truncf %22 : vector<4x8x8xf32> to vector<4x8x8xbf16>
    %24 = arith.truncf %15 : vector<4x8x8xf32> to vector<4x8x8xbf16>
    "tpu.trace_start"() <{level = 10 : i32, message = "hqe,hke->hqk"}> : () -> ()
    %cst_23 = arith.constant dense<0.000000e+00> : vector<4x8x8xf32>
    %25 = tpu.matmul %23, %24, %cst_23 {dimension_numbers = #tpu.dot_dimension_numbers<[2], [2], [1], [1], [0, 0, 0, 1, 1, 1], [0], [0]>} : vector<4x8x8xbf16>, vector<4x8x8xbf16>, vector<4x8x8xf32> -> vector<4x8x8xf32>
    "tpu.trace_stop"() : () -> ()
    %cst_24 = arith.constant dense<0xFF800000> : vector<4x8xf32>
    %26 = vector.multi_reduction <maximumf>, %25, %cst_24 [2] : vector<4x8x8xf32> to vector<4x8xf32>
    %27 = vector.shape_cast %26 : vector<4x8xf32> to vector<4x8x1xf32>
    %28 = vector.broadcast %27 : vector<4x8x1xf32> to vector<4x8x8xf32>
    %29 = arith.subf %25, %28 : vector<4x8x8xf32>
    %30 = math.exp %29 : vector<4x8x8xf32>
    %cst_25 = arith.constant dense<0.000000e+00> : vector<4x8xf32>
    %31 = vector.multi_reduction <add>, %30, %cst_25 [2] : vector<4x8x8xf32> to vector<4x8xf32>
    %32 = vector.shape_cast %31 : vector<4x8xf32> to vector<4x8x1xf32>
    %33 = tpu.reciprocal %32 {approx = true} : vector<4x8x1xf32> -> vector<4x8x1xf32>
    %34 = vector.broadcast %33 : vector<4x8x1xf32> to vector<4x8x8xf32>
    %35 = arith.mulf %30, %34 : vector<4x8x8xf32>
    %36 = arith.truncf %35 : vector<4x8x8xf32> to vector<4x8x8xbf16>
    %37 = arith.truncf %20 : vector<4x8x8xf32> to vector<4x8x8xbf16>
    "tpu.trace_start"() <{level = 10 : i32, message = "hqk,hke->hqe"}> : () -> ()
    %cst_26 = arith.constant dense<0.000000e+00> : vector<4x8x8xf32>
    %38 = tpu.matmul %36, %37, %cst_26 {dimension_numbers = #tpu.dot_dimension_numbers<[2], [1], [1], [2], [0, 0, 0, 1, 1, 2], [0], [0]>} : vector<4x8x8xbf16>, vector<4x8x8xbf16>, vector<4x8x8xf32> -> vector<4x8x8xf32>
    "tpu.trace_stop"() : () -> ()
    %39 = arith.truncf %38 : vector<4x8x8xf32> to vector<4x8x8xbf16>
    %c0_27 = arith.constant 0 : index
    %c0_28 = arith.constant 0 : index
    %c0_29 = arith.constant 0 : index
    %40 = vector.load %arg8[%c0_27, %c0_28, %c0_29] : memref<4x8x32xbf16, #tpu.memory_space<vmem>>, vector<4x8x32xbf16>
    "tpu.trace_start"() <{level = 10 : i32, message = "hse,hed->hsd"}> : () -> ()
    %cst_30 = arith.constant dense<0.000000e+00> : vector<4x8x32xf32>
    %41 = tpu.matmul %39, %40, %cst_30 {dimension_numbers = #tpu.dot_dimension_numbers<[2], [1], [1], [2], [0, 0, 0, 1, 1, 2], [0], [0]>} : vector<4x8x8xbf16>, vector<4x8x32xbf16>, vector<4x8x32xf32> -> vector<4x8x32xf32>
    "tpu.trace_stop"() : () -> ()
    %cst_31 = arith.constant dense<0.000000e+00> : vector<8x32xf32>
    %42 = vector.multi_reduction <add>, %41, %cst_31 [0] : vector<4x8x32xf32> to vector<8x32xf32>
    %c0_32 = arith.constant 0 : index
    %c0_33 = arith.constant 0 : index
    %43 = vector.load %arg9[%c0_32, %c0_33] : memref<1x32xf32, #tpu.memory_space<vmem>>, vector<1x32xf32>
    %44 = vector.broadcast %43 : vector<1x32xf32> to vector<8x32xf32>
    %45 = arith.addf %42, %44 : vector<8x32xf32>
    %46 = arith.addf %1, %45 : vector<8x32xf32>
    %c0_34 = arith.constant 0 : index
    %c0_35 = arith.constant 0 : index
    %47 = vector.load %arg10[%c0_34, %c0_35] : memref<1x32xf32, #tpu.memory_space<vmem>>, vector<1x32xf32>
    %c0_36 = arith.constant 0 : index
    %c0_37 = arith.constant 0 : index
    %48 = vector.load %arg11[%c0_36, %c0_37] : memref<1x32xf32, #tpu.memory_space<vmem>>, vector<1x32xf32>
    %cst_38 = arith.constant dense<0.000000e+00> : vector<8xf32>
    %49 = vector.multi_reduction <add>, %46, %cst_38 [1] : vector<8x32xf32> to vector<8xf32>
    %50 = vector.shape_cast %49 : vector<8xf32> to vector<8x1xf32>
    %cst_39 = arith.constant 3.200000e+01 : f32
    %51 = vector.broadcast %cst_39 : f32 to vector<8x1xf32>
    %52 = arith.divf %50, %51 : vector<8x1xf32>
    %53 = vector.broadcast %52 : vector<8x1xf32> to vector<8x32xf32>
    %54 = arith.subf %46, %53 : vector<8x32xf32>
    %55 = arith.mulf %54, %54 : vector<8x32xf32>
    %cst_40 = arith.constant dense<0.000000e+00> : vector<8xf32>
    %56 = vector.multi_reduction <add>, %55, %cst_40 [1] : vector<8x32xf32> to vector<8xf32>
    %57 = vector.shape_cast %56 : vector<8xf32> to vector<8x1xf32>
    %cst_41 = arith.constant 3.200000e+01 : f32
    %58 = vector.broadcast %cst_41 : f32 to vector<8x1xf32>
    %59 = arith.divf %57, %58 : vector<8x1xf32>
    %60 = vector.broadcast %52 : vector<8x1xf32> to vector<8x32xf32>
    %61 = arith.subf %46, %60 : vector<8x32xf32>
    %cst_42 = arith.constant 9.99999974E-6 : f32
    %62 = vector.broadcast %cst_42 : f32 to vector<8x1xf32>
    %63 = arith.addf %59, %62 : vector<8x1xf32>
    %64 = math.rsqrt %63 : vector<8x1xf32>
    %65 = vector.broadcast %64 : vector<8x1xf32> to vector<8x32xf32>
    %66 = arith.mulf %61, %65 : vector<8x32xf32>
    %67 = vector.broadcast %47 : vector<1x32xf32> to vector<8x32xf32>
    %68 = arith.mulf %66, %67 : vector<8x32xf32>
    %69 = vector.broadcast %48 : vector<1x32xf32> to vector<8x32xf32>
    %70 = arith.addf %68, %69 : vector<8x32xf32>
    %71 = arith.truncf %70 : vector<8x32xf32> to vector<8x32xbf16>
    %c0_43 = arith.constant 0 : index
    %c0_44 = arith.constant 0 : index
    %72 = vector.load %arg12[%c0_43, %c0_44] : memref<32x64xbf16, #tpu.memory_space<vmem>>, vector<32x64xbf16>
    %cst_45 = arith.constant dense<0.000000e+00> : vector<8x64xf32>
    %73 = tpu.matmul %71, %72, %cst_45 {dimension_numbers = #tpu.dot_dimension_numbers<[1], [0], [0], [1], [0, 0, 1, 1], [], []>} : vector<8x32xbf16>, vector<32x64xbf16>, vector<8x64xf32> -> vector<8x64xf32>
    %c0_46 = arith.constant 0 : index
    %c0_47 = arith.constant 0 : index
    %74 = vector.load %arg13[%c0_46, %c0_47] : memref<1x64xf32, #tpu.memory_space<vmem>>, vector<1x64xf32>
    %75 = vector.broadcast %74 : vector<1x64xf32> to vector<8x64xf32>
    %76 = arith.addf %73, %75 : vector<8x64xf32>
    %cst_48 = arith.constant 0.000000e+00 : f32
    %77 = vector.broadcast %cst_48 : f32 to vector<8x64xf32>
    %78 = arith.maximumf %76, %77 : vector<8x64xf32>
    %79 = arith.truncf %78 : vector<8x64xf32> to vector<8x64xbf16>
    %c0_49 = arith.constant 0 : index
    %c0_50 = arith.constant 0 : index
    %80 = vector.load %arg14[%c0_49, %c0_50] : memref<64x32xbf16, #tpu.memory_space<vmem>>, vector<64x32xbf16>
    %cst_51 = arith.constant dense<0.000000e+00> : vector<8x32xf32>
    %81 = tpu.matmul %79, %80, %cst_51 {dimension_numbers = #tpu.dot_dimension_numbers<[1], [0], [0], [1], [0, 0, 1, 1], [], []>} : vector<8x64xbf16>, vector<64x32xbf16>, vector<8x32xf32> -> vector<8x32xf32>
    %c0_52 = arith.constant 0 : index
    %c0_53 = arith.constant 0 : index
    %82 = vector.load %arg15[%c0_52, %c0_53] : memref<1x32xf32, #tpu.memory_space<vmem>>, vector<1x32xf32>
    %83 = vector.broadcast %82 : vector<1x32xf32> to vector<8x32xf32>
    %84 = arith.addf %81, %83 : vector<8x32xf32>
    %85 = arith.addf %70, %84 : vector<8x32xf32>
    %c0_54 = arith.constant 0 : index
    %c0_55 = arith.constant 0 : index
    %86 = vector.load %arg16[%c0_54, %c0_55] : memref<1x32xf32, #tpu.memory_space<vmem>>, vector<1x32xf32>
    %c0_56 = arith.constant 0 : index
    %c0_57 = arith.constant 0 : index
    %87 = vector.load %arg17[%c0_56, %c0_57] : memref<1x32xf32, #tpu.memory_space<vmem>>, vector<1x32xf32>
    %cst_58 = arith.constant dense<0.000000e+00> : vector<8xf32>
    %88 = vector.multi_reduction <add>, %85, %cst_58 [1] : vector<8x32xf32> to vector<8xf32>
    %89 = vector.shape_cast %88 : vector<8xf32> to vector<8x1xf32>
    %cst_59 = arith.constant 3.200000e+01 : f32
    %90 = vector.broadcast %cst_59 : f32 to vector<8x1xf32>
    %91 = arith.divf %89, %90 : vector<8x1xf32>
    %92 = vector.broadcast %91 : vector<8x1xf32> to vector<8x32xf32>
    %93 = arith.subf %85, %92 : vector<8x32xf32>
    %94 = arith.mulf %93, %93 : vector<8x32xf32>
    %cst_60 = arith.constant dense<0.000000e+00> : vector<8xf32>
    %95 = vector.multi_reduction <add>, %94, %cst_60 [1] : vector<8x32xf32> to vector<8xf32>
    %96 = vector.shape_cast %95 : vector<8xf32> to vector<8x1xf32>
    %cst_61 = arith.constant 3.200000e+01 : f32
    %97 = vector.broadcast %cst_61 : f32 to vector<8x1xf32>
    %98 = arith.divf %96, %97 : vector<8x1xf32>
    %99 = vector.broadcast %91 : vector<8x1xf32> to vector<8x32xf32>
    %100 = arith.subf %85, %99 : vector<8x32xf32>
    %cst_62 = arith.constant 9.99999974E-6 : f32
    %101 = vector.broadcast %cst_62 : f32 to vector<8x1xf32>
    %102 = arith.addf %98, %101 : vector<8x1xf32>
    %103 = math.rsqrt %102 : vector<8x1xf32>
    %104 = vector.broadcast %103 : vector<8x1xf32> to vector<8x32xf32>
    %105 = arith.mulf %100, %104 : vector<8x32xf32>
    %106 = vector.broadcast %86 : vector<1x32xf32> to vector<8x32xf32>
    %107 = arith.mulf %105, %106 : vector<8x32xf32>
    %108 = vector.broadcast %87 : vector<1x32xf32> to vector<8x32xf32>
    %109 = arith.addf %107, %108 : vector<8x32xf32>
    %c0_63 = arith.constant 0 : index
    %c0_64 = arith.constant 0 : index
    %c0_65 = arith.constant 0 : index
    %110 = vector.load %arg18[%c0_63, %c0_64, %c0_65] : memref<1x8x32xf32, #tpu.memory_space<vmem>>, vector<1x8x32xf32>
    %111 = vector.shape_cast %110 : vector<1x8x32xf32> to vector<8x32xf32>
    %112 = vector.shape_cast %109 : vector<8x32xf32> to vector<1x8x32xf32>
    tpu.vector_store %arg18[%c0_63, %c0_64, %c0_65], %112 {strides = array<i32>} : memref<1x8x32xf32, #tpu.memory_space<vmem>>, vector<1x8x32xf32>,
    return
  }
  func.func @transform_0(%arg0: i32) -> (i32, i32, i32) {
    %c0_i32 = arith.constant 0 : i32
    %c0_i32_0 = arith.constant 0 : i32
    %c0_i32_1 = arith.constant 0 : i32
    return %arg0, %c0_i32, %c0_i32_0 : i32, i32, i32
  }
  func.func @transform_1(%arg0: i32) -> (i32, i32, i32) {
    %c0_i32 = arith.constant 0 : i32
    %c0_i32_0 = arith.constant 0 : i32
    %c0_i32_1 = arith.constant 0 : i32
    %c0_i32_2 = arith.constant 0 : i32
    return %c0_i32, %c0_i32_0, %c0_i32_1 : i32, i32, i32
  }
  func.func @transform_2(%arg0: i32) -> (i32, i32, i32) {
    %c0_i32 = arith.constant 0 : i32
    %c0_i32_0 = arith.constant 0 : i32
    %c0_i32_1 = arith.constant 0 : i32
    %c0_i32_2 = arith.constant 0 : i32
    return %c0_i32, %c0_i32_0, %c0_i32_1 : i32, i32, i32
  }
  func.func @transform_3(%arg0: i32) -> (i32, i32, i32) {
    %c0_i32 = arith.constant 0 : i32
    %c0_i32_0 = arith.constant 0 : i32
    %c0_i32_1 = arith.constant 0 : i32
    %c0_i32_2 = arith.constant 0 : i32
    return %c0_i32, %c0_i32_0, %c0_i32_1 : i32, i32, i32
  }
  func.func @transform_4(%arg0: i32) -> (i32, i32, i32) {
    %c0_i32 = arith.constant 0 : i32
    %c0_i32_0 = arith.constant 0 : i32
    %c0_i32_1 = arith.constant 0 : i32
    %c0_i32_2 = arith.constant 0 : i32
    return %c0_i32, %c0_i32_0, %c0_i32_1 : i32, i32, i32
  }
  func.func @transform_5(%arg0: i32) -> (i32, i32, i32) {
    %c0_i32 = arith.constant 0 : i32
    %c0_i32_0 = arith.constant 0 : i32
    %c0_i32_1 = arith.constant 0 : i32
    %c0_i32_2 = arith.constant 0 : i32
    return %c0_i32, %c0_i32_0, %c0_i32_1 : i32, i32, i32
  }
  func.func @transform_6(%arg0: i32) -> (i32, i32, i32) {
    %c0_i32 = arith.constant 0 : i32
    %c0_i32_0 = arith.constant 0 : i32
    %c0_i32_1 = arith.constant 0 : i32
    %c0_i32_2 = arith.constant 0 : i32
    return %c0_i32, %c0_i32_0, %c0_i32_1 : i32, i32, i32
  }
  func.func @transform_7(%arg0: i32) -> (i32, i32, i32) {
    %c0_i32 = arith.constant 0 : i32
    %c0_i32_0 = arith.constant 0 : i32
    %c0_i32_1 = arith.constant 0 : i32
    %c0_i32_2 = arith.constant 0 : i32
    return %c0_i32, %c0_i32_0, %c0_i32_1 : i32, i32, i32
  }
  func.func @transform_8(%arg0: i32) -> (i32, i32) {
    %c0_i32 = arith.constant 0 : i32
    %c0_i32_0 = arith.constant 0 : i32
    %c0_i32_1 = arith.constant 0 : i32
    return %c0_i32, %c0_i32_0 : i32, i32
  }
  func.func @transform_9(%arg0: i32) -> (i32, i32) {
    %c0_i32 = arith.constant 0 : i32
    %c0_i32_0 = arith.constant 0 : i32
    %c0_i32_1 = arith.constant 0 : i32
    return %c0_i32, %c0_i32_0 : i32, i32
  }
  func.func @transform_10(%arg0: i32) -> (i32, i32) {
    %c0_i32 = arith.constant 0 : i32
    %c0_i32_0 = arith.constant 0 : i32
    %c0_i32_1 = arith.constant 0 : i32
    return %c0_i32, %c0_i32_0 : i32, i32
  }
  func.func @transform_11(%arg0: i32) -> (i32, i32) {
    %c0_i32 = arith.constant 0 : i32
    %c0_i32_0 = arith.constant 0 : i32
    %c0_i32_1 = arith.constant 0 : i32
    return %c0_i32, %c0_i32_0 : i32, i32
  }
  func.func @transform_12(%arg0: i32) -> (i32, i32) {
    %c0_i32 = arith.constant 0 : i32
    %c0_i32_0 = arith.constant 0 : i32
    %c0_i32_1 = arith.constant 0 : i32
    return %c0_i32, %c0_i32_0 : i32, i32
  }
  func.func @transform_13(%arg0: i32) -> (i32, i32) {
    %c0_i32 = arith.constant 0 : i32
    %c0_i32_0 = arith.constant 0 : i32
    %c0_i32_1 = arith.constant 0 : i32
    return %c0_i32, %c0_i32_0 : i32, i32
  }
  func.func @transform_14(%arg0: i32) -> (i32, i32) {
    %c0_i32 = arith.constant 0 : i32
    %c0_i32_0 = arith.constant 0 : i32
    %c0_i32_1 = arith.constant 0 : i32
    return %c0_i32, %c0_i32_0 : i32, i32
  }
  func.func @transform_15(%arg0: i32) -> (i32, i32) {
    %c0_i32 = arith.constant 0 : i32
    %c0_i32_0 = arith.constant 0 : i32
    %c0_i32_1 = arith.constant 0 : i32
    return %c0_i32, %c0_i32_0 : i32, i32
  }
  func.func @transform_16(%arg0: i32) -> (i32, i32) {
    %c0_i32 = arith.constant 0 : i32
    %c0_i32_0 = arith.constant 0 : i32
    %c0_i32_1 = arith.constant 0 : i32
    return %c0_i32, %c0_i32_0 : i32, i32
  }
  func.func @transform_17(%arg0: i32) -> (i32, i32, i32) {
    %c0_i32 = arith.constant 0 : i32
    %c0_i32_0 = arith.constant 0 : i32
    %c0_i32_1 = arith.constant 0 : i32
    return %arg0, %c0_i32, %c0_i32_0 : i32, i32, i32
  }
}

module attributes {stable_mosaic.version = 11 : i64} {
  func.func @_ln_linear_kernel(%arg0: i32, %arg1: memref<16x32xf32, #tpu.memory_space<vmem>>, %arg2: memref<1x32xf32, #tpu.memory_space<vmem>>, %arg3: memref<1x32xf32, #tpu.memory_space<vmem>>, %arg4: memref<32x128xbf16, #tpu.memory_space<vmem>>, %arg5: memref<1x128xf32, #tpu.memory_space<vmem>>, %arg6: memref<16x128xf32, #tpu.memory_space<vmem>>) attributes {dimension_semantics = [#tpu.dimension_semantics<parallel>], iteration_bounds = array<i64: 1>, scalar_prefetch = 0 : i64, scratch_operands = 0 : i64, tpu.core_type = #tpu.core_type<tc>, window_params = [{transform_indices = @transform_0, window_bounds = array<i64: 16, 32>}, {pipeline_mode = #tpu.pipeline_mode<synchronous>, transform_indices = @transform_1, window_bounds = array<i64: 1, 32>}, {pipeline_mode = #tpu.pipeline_mode<synchronous>, transform_indices = @transform_2, window_bounds = array<i64: 1, 32>}, {pipeline_mode = #tpu.pipeline_mode<synchronous>, transform_indices = @transform_3, window_bounds = array<i64: 32, 128>}, {pipeline_mode = #tpu.pipeline_mode<synchronous>, transform_indices = @transform_4, window_bounds = array<i64: 1, 128>}, {transform_indices = @transform_5, window_bounds = array<i64: 16, 128>}]} {
    %c0 = arith.constant 0 : index
    %c0_0 = arith.constant 0 : index
    %0 = vector.load %arg1[%c0, %c0_0] : memref<16x32xf32, #tpu.memory_space<vmem>>, vector<16x32xf32>
    %c0_1 = arith.constant 0 : index
    %c0_2 = arith.constant 0 : index
    %1 = vector.load %arg2[%c0_1, %c0_2] : memref<1x32xf32, #tpu.memory_space<vmem>>, vector<1x32xf32>
    %c0_3 = arith.constant 0 : index
    %c0_4 = arith.constant 0 : index
    %2 = vector.load %arg3[%c0_3, %c0_4] : memref<1x32xf32, #tpu.memory_space<vmem>>, vector<1x32xf32>
    %cst = arith.constant dense<0.000000e+00> : vector<16xf32>
    %3 = vector.multi_reduction <add>, %0, %cst [1] : vector<16x32xf32> to vector<16xf32>
    %4 = vector.shape_cast %3 : vector<16xf32> to vector<16x1xf32>
    %cst_5 = arith.constant 3.200000e+01 : f32
    %5 = vector.broadcast %cst_5 : f32 to vector<16x1xf32>
    %6 = arith.divf %4, %5 : vector<16x1xf32>
    %7 = vector.broadcast %6 : vector<16x1xf32> to vector<16x32xf32>
    %8 = arith.subf %0, %7 : vector<16x32xf32>
    %9 = arith.mulf %8, %8 : vector<16x32xf32>
    %cst_6 = arith.constant dense<0.000000e+00> : vector<16xf32>
    %10 = vector.multi_reduction <add>, %9, %cst_6 [1] : vector<16x32xf32> to vector<16xf32>
    %11 = vector.shape_cast %10 : vector<16xf32> to vector<16x1xf32>
    %cst_7 = arith.constant 3.200000e+01 : f32
    %12 = vector.broadcast %cst_7 : f32 to vector<16x1xf32>
    %13 = arith.divf %11, %12 : vector<16x1xf32>
    %14 = vector.broadcast %6 : vector<16x1xf32> to vector<16x32xf32>
    %15 = arith.subf %0, %14 : vector<16x32xf32>
    %cst_8 = arith.constant 9.99999974E-6 : f32
    %16 = vector.broadcast %cst_8 : f32 to vector<16x1xf32>
    %17 = arith.addf %13, %16 : vector<16x1xf32>
    %18 = math.rsqrt %17 : vector<16x1xf32>
    %19 = vector.broadcast %18 : vector<16x1xf32> to vector<16x32xf32>
    %20 = arith.mulf %15, %19 : vector<16x32xf32>
    %21 = vector.broadcast %1 : vector<1x32xf32> to vector<16x32xf32>
    %22 = arith.mulf %20, %21 : vector<16x32xf32>
    %23 = vector.broadcast %2 : vector<1x32xf32> to vector<16x32xf32>
    %24 = arith.addf %22, %23 : vector<16x32xf32>
    %25 = arith.truncf %24 : vector<16x32xf32> to vector<16x32xbf16>
    %c0_9 = arith.constant 0 : index
    %c0_10 = arith.constant 0 : index
    %26 = vector.load %arg4[%c0_9, %c0_10] : memref<32x128xbf16, #tpu.memory_space<vmem>>, vector<32x128xbf16>
    %cst_11 = arith.constant dense<0.000000e+00> : vector<16x128xf32>
    %27 = tpu.matmul %25, %26, %cst_11 {dimension_numbers = #tpu.dot_dimension_numbers<[1], [0], [0], [1], [0, 0, 1, 1], [], []>} : vector<16x32xbf16>, vector<32x128xbf16>, vector<16x128xf32> -> vector<16x128xf32>
    %c0_12 = arith.constant 0 : index
    %c0_13 = arith.constant 0 : index
    %28 = vector.load %arg5[%c0_12, %c0_13] : memref<1x128xf32, #tpu.memory_space<vmem>>, vector<1x128xf32>
    %29 = vector.broadcast %28 : vector<1x128xf32> to vector<16x128xf32>
    %30 = arith.addf %27, %29 : vector<16x128xf32>
    %c0_14 = arith.constant 0 : index
    %c0_15 = arith.constant 0 : index
    %31 = vector.load %arg6[%c0_14, %c0_15] : memref<16x128xf32, #tpu.memory_space<vmem>>, vector<16x128xf32>
    tpu.vector_store %arg6[%c0_14, %c0_15], %30 {strides = array<i32>} : memref<16x128xf32, #tpu.memory_space<vmem>>, vector<16x128xf32>,
    return
  }
  func.func @transform_0(%arg0: i32) -> (i32, i32) {
    %c0_i32 = arith.constant 0 : i32
    %c0_i32_0 = arith.constant 0 : i32
    return %arg0, %c0_i32 : i32, i32
  }
  func.func @transform_1(%arg0: i32) -> (i32, i32) {
    %c0_i32 = arith.constant 0 : i32
    %c0_i32_0 = arith.constant 0 : i32
    %c0_i32_1 = arith.constant 0 : i32
    return %c0_i32, %c0_i32_0 : i32, i32
  }
  func.func @transform_2(%arg0: i32) -> (i32, i32) {
    %c0_i32 = arith.constant 0 : i32
    %c0_i32_0 = arith.constant 0 : i32
    %c0_i32_1 = arith.constant 0 : i32
    return %c0_i32, %c0_i32_0 : i32, i32
  }
  func.func @transform_3(%arg0: i32) -> (i32, i32) {
    %c0_i32 = arith.constant 0 : i32
    %c0_i32_0 = arith.constant 0 : i32
    %c0_i32_1 = arith.constant 0 : i32
    return %c0_i32, %c0_i32_0 : i32, i32
  }
  func.func @transform_4(%arg0: i32) -> (i32, i32) {
    %c0_i32 = arith.constant 0 : i32
    %c0_i32_0 = arith.constant 0 : i32
    %c0_i32_1 = arith.constant 0 : i32
    return %c0_i32, %c0_i32_0 : i32, i32
  }
  func.func @transform_5(%arg0: i32) -> (i32, i32) {
    %c0_i32 = arith.constant 0 : i32
    %c0_i32_0 = arith.constant 0 : i32
    return %arg0, %c0_i32 : i32, i32
  }
}

</mosaic_0001>

<bundles_post_ra>
// kernel: transformer_forward.4
= control target key start
LH: loop header
LB: loop body
LE: loop exit
PB: predicated region body
PF: predicated region fallthrough
CT: control target
= control target key end

     0   :  { %vm33_vm0 = vcmask 1041408   ;;  %vm29_vm1 = vcmask 31744   ;;  %vm53_vm2 = vcmask 261120   ;;  %v132_v12 = vmov 32.0   ;;  %s193_s1 = inlined_call_operand.vmem [shape: bf16[4,32], index: 1, kind: input, shape index: {}]   ;;  %s194_s0 = inlined_call_operand.vmem [shape: f32[16,4], index: 0, kind: input, shape index: {}]   ;;  %s195_s2 = inlined_call_operand.vmem [shape: f32[1,32], index: 2, kind: input, shape index: {}]   ;;  %s196_s3 = inlined_call_operand.vmem [shape: f32[1,32], index: 3, kind: input, shape index: {}]   ;;  %s197_s4 = inlined_call_operand.vmem [shape: f32[1,32], index: 4, kind: input, shape index: {}]   ;;  %s198_s5 = inlined_call_operand.vmem [shape: f32[16,32], index: 5, kind: output, shape index: {}]  }
   0x1   :  { %v24_v0 = vld [vmem:[%s193_s1] sm:$0x3]  ;;  %v22_v2 = vld [vmem:[%s194_s0 + $0x8] sm:$0xff]  ;;  %126 = vrcp.f32 %v132_v12 }
   0x2   :  { %v21_v1 = vld [vmem:[%s194_s0] sm:$0xff]  ;;  %v35_v3 = vsel %vm33_vm0, %v24_v0, 0 }
   0x3   :  { %v23_v4 = vpack.c.bf16 %v22_v2, %v21_v1  ;;  %44 = vmatpush.bf16.msra.mxu0 %v35_v3  ;;  %v123_v5 = vld [vmem:[%s195_s2] ss:$0 sm:$0xff] }
   0x4   :  { %v124_v43 = vld [vmem:[%s196_s3] ss:$0 sm:$0xff] }
   0x5   :  { %v125_v46 = vld [vmem:[%s197_s4] ss:$0 sm:$0xff] }
   0x6   :  { %121 = vmatmul.msk.bf16.vlgmr.msra.gmra.mxu0 %vm29_vm1, %v23_v4 }
   0x7   :  { %v127_v13 = vpop.eup %126 }
   0x8   :  { %v61_v14 = vmul.f32 32.0, %v127_v13  ;;  %vm65_vm3 = vweird.f32 %v127_v13 }
   0xa   :  { %v62_v15 = vsub.f32 1.0, %v61_v14 }
   0xc   :  { %v63_v16 = vmul.f32 %v127_v13, %v62_v15 }
   0xe   :  { %v64_v17 = vadd.f32 %v127_v13, %v63_v16 }
  0x10   :  { %v66_v18 = vsel %vm65_vm3, %v127_v13, %v64_v17 }
  0x83   :  { %v46_v6 = vpop.f32.mrf.mxu0 }
  0x84   :  { %v47_v7 = vadd.f32 %v123_v5, %v46_v6 }
  0x86   :  { %v54_v8 = vsel %vm53_vm2, %v47_v7, 0.0 }
  0x87   :  { %55 = vadd.xlane.f32.xlu0 %v54_v8 }
  0x8b   :  { %v48_v9 = vpop.f32.mrf.mxu0 }
  0x8c   :  { %v49_v10 = vadd.f32 %v123_v5, %v48_v9 }
  0x8e   :  { %v57_v11 = vsel %vm53_vm2, %v49_v10, 0.0 }
  0x8f   :  { %58 = vadd.xlane.f32.xlu0 %v57_v11 }
  0xfa   :  { %v56_v19 = vpop.xlane.xlu0 %55 }
  0xfb   :  { %v67_v20 = vmul.f32 %v66_v18, %v56_v19 }
  0xfd   :  { %v69_v21 = vsub.f32 %v47_v7, %v67_v20 }
  0xff   :  { %v71_v22 = vmul.f32 %v69_v21, %v69_v21 }
 0x101   :  { %v73_v23 = vsel %vm53_vm2, %v71_v22, 0.0 }
 0x102   :  { %74 = vadd.xlane.f32.xlu1 %v73_v23  ;;  %v59_v24 = vpop.xlane.xlu0 %58 }
 0x103   :  { %v68_v25 = vmul.f32 %v66_v18, %v59_v24 }
 0x105   :  { %v70_v26 = vsub.f32 %v49_v10, %v68_v25 }
 0x107   :  { %v72_v27 = vmul.f32 %v70_v26, %v70_v26 }
 0x109   :  { %v76_v28 = vsel %vm53_vm2, %v72_v27, 0.0 }
 0x10a   :  { %77 = vadd.xlane.f32.xlu1 %v76_v28 }
 0x175   :  { %v75_v29 = vpop.xlane.xlu1 %74 }
 0x176   :  { %v79_v30 = vmul.f32 %v75_v29, %v66_v18 }
 0x178   :  { %v81_v31 = vadd.f32 1e-05, %v79_v30 }
 0x17a   :  { %128 = vrsqrt.f32 %v81_v31  ;;  %vm89_vm5 = vweird.f32 %v81_v31 }
 0x17d   :  { %v78_v32 = vpop.xlane.xlu1 %77 }
 0x17e   :  { %v80_v33 = vmul.f32 %v78_v32, %v66_v18 }
 0x180   :  { %v129_v34 = vpop.eup %128  ;;  %v82_v35 = vadd.f32 1e-05, %v80_v33 }
 0x181   :  { %v84_v36 = vmul.f32 %v129_v34, %v81_v31  ;;  %vm90_vm4 = vweird.f32 %v129_v34 }
 0x182   :  { %130 = vrsqrt.f32 %v82_v35  ;;  %vm91_vm6 = vmor %vm89_vm5, %vm90_vm4  ;;  %vm99_vm8 = vweird.f32 %v82_v35 }
 0x183   :  { %v85_v37 = vmul.f32 %v129_v34, %v84_v36 }
 0x185   :  { %v86_v38 = vmul.f32 0.5, %v85_v37 }
 0x187   :  { %v87_v39 = vsub.f32 1.5, %v86_v38 }
 0x188   :  { %v131_v40 = vpop.eup %130 }
 0x189   :  { %v88_v41 = vmul.f32 %v129_v34, %v87_v39  ;;  %v94_v42 = vmul.f32 %v131_v40, %v82_v35  ;;  %vm100_vm7 = vweird.f32 %v131_v40 }
 0x18a   :  { %vm101_vm9 = vmor %vm99_vm8, %vm100_vm7 }
 0x18b   :  { %v92_v44 = vsel %vm91_vm6, %v129_v34, %v88_v41  ;;  %v95_v45 = vmul.f32 %v131_v40, %v94_v42 }
 0x18c   :  { %v103_v47 = vmul.f32 %v92_v44, %v69_v21 }
 0x18d   :  { %v96_v48 = vmul.f32 0.5, %v95_v45 }
 0x18e   :  { %v108_v49 = vmul.f32 %v124_v43, %v103_v47 }
 0x18f   :  { %v97_v50 = vsub.f32 1.5, %v96_v48 }
 0x190   :  { %v113_v51 = vadd.f32 %v125_v46, %v108_v49 }
 0x191   :  { %v98_v52 = vmul.f32 %v131_v40, %v97_v50 }
 0x192   :  { %115 = vst.msk [vmem:[%s198_s5] sm:$0xff] %vm53_vm2, %v113_v51 }
 0x193   :  { %v102_v53 = vsel %vm101_vm9, %v131_v40, %v98_v52 }
 0x194   :  { %v104_v54 = vmul.f32 %v102_v53, %v70_v26 }
 0x196   :  { %v109_v55 = vmul.f32 %v124_v43, %v104_v54 }
 0x198   :  { %v114_v56 = vadd.f32 %v125_v46, %v109_v55 }
 0x19a   :  { %116 = vst.msk [vmem:[%s198_s5 + $0x8] sm:$0xff] %vm53_vm2, %v114_v56 }

// kernel: transformer_forward.7
= control target key start
LH: loop header
LB: loop body
LE: loop exit
PB: predicated region body
PF: predicated region fallthrough
CT: control target
= control target key end

     0   :  { %vm25_vm0 = vcmask 261120   ;;  %v152_v4 = vmov 32.0   ;;  %s215_s0 = inlined_call_operand.vmem [shape: f32[16,32], index: 0, kind: input, shape index: {}]   ;;  %s216_s1 = inlined_call_operand.vmem [shape: f32[1,32], index: 1, kind: input, shape index: {}]   ;;  %s217_s2 = inlined_call_operand.vmem [shape: f32[1,32], index: 2, kind: input, shape index: {}]   ;;  %s218_s4 = inlined_call_operand.vmem [shape: f32[1,128], index: 4, kind: input, shape index: {}]   ;;  %s219_s3 = inlined_call_operand.vmem [shape: bf16[32,128], index: 3, kind: input, shape index: {}]   ;;  %s220_s5 = inlined_call_operand.vmem [shape: f32[16,128], index: 5, kind: output, shape index: {}]  }
   0x1   :  { %v21_v0 = vld [vmem:[%s215_s0] sm:$0xff]  ;;  %v22_v2 = vld [vmem:[%s215_s0 + $0x8] sm:$0xff]  ;;  %146 = vrcp.f32 %v152_v4 }
   0x2   :  { %v26_v1 = vsel %vm25_vm0, %v21_v0, 0.0  ;;  %v29_v3 = vsel %vm25_vm0, %v22_v2, 0.0  ;;  %v141_v21 = vld [vmem:[%s219_s3 + $0x8] sm:$0xff]  ;;  %v140_v23 = vld [vmem:[%s219_s3] sm:$0xff] }
   0x3   :  { %27 = vadd.xlane.f32.xlu0 %v26_v1  ;;  %117 = vmatpush.bf16.msra.mxu0 %v141_v21  ;;  %v143_v42 = vld [vmem:[%s216_s1] ss:$0 sm:$0xff] }
   0x4   :  { %v144_v47 = vld [vmem:[%s217_s2] ss:$0 sm:$0xff] }
   0x5   :  { %v145_v52 = vld [vmem:[%s218_s4] ss:$0 sm:$0xff] }
   0x7   :  { %v147_v5 = vpop.eup %146  ;;  %118 = vmatpush.bf16.msra.mxu0 %v140_v23 }
   0x8   :  { %v33_v6 = vmul.f32 32.0, %v147_v5  ;;  %vm37_vm1 = vweird.f32 %v147_v5 }
   0xa   :  { %v34_v7 = vsub.f32 1.0, %v33_v6 }
   0xb   :  { %30 = vadd.xlane.f32.xlu0 %v29_v3 }
   0xc   :  { %v35_v8 = vmul.f32 %v147_v5, %v34_v7 }
   0xe   :  { %v36_v9 = vadd.f32 %v147_v5, %v35_v8 }
  0x10   :  { %v38_v10 = vsel %vm37_vm1, %v147_v5, %v36_v9 }
  0x76   :  { %v28_v11 = vpop.xlane.xlu0 %27 }
  0x77   :  { %v39_v12 = vmul.f32 %v38_v10, %v28_v11 }
  0x79   :  { %v41_v13 = vsub.f32 %v21_v0, %v39_v12 }
  0x7b   :  { %v43_v14 = vmul.f32 %v41_v13, %v41_v13 }
  0x7d   :  { %v45_v15 = vsel %vm25_vm0, %v43_v14, 0.0 }
  0x7e   :  { %46 = vadd.xlane.f32.xlu1 %v45_v15  ;;  %v31_v16 = vpop.xlane.xlu0 %30 }
  0x7f   :  { %v40_v17 = vmul.f32 %v38_v10, %v31_v16 }
  0x81   :  { %v42_v18 = vsub.f32 %v22_v2, %v40_v17 }
  0x83   :  { %v44_v19 = vmul.f32 %v42_v18, %v42_v18 }
  0x85   :  { %v48_v20 = vsel %vm25_vm0, %v44_v19, 0.0 }
  0x86   :  { %49 = vadd.xlane.f32.xlu1 %v48_v20 }
  0xf1   :  { %v47_v22 = vpop.xlane.xlu1 %46 }
  0xf2   :  { %v51_v24 = vmul.f32 %v47_v22, %v38_v10 }
  0xf4   :  { %v53_v25 = vadd.f32 1e-05, %v51_v24 }
  0xf6   :  { %148 = vrsqrt.f32 %v53_v25  ;;  %vm61_vm3 = vweird.f32 %v53_v25 }
  0xf9   :  { %v50_v26 = vpop.xlane.xlu1 %49 }
  0xfa   :  { %v52_v27 = vmul.f32 %v50_v26, %v38_v10 }
  0xfc   :  { %v149_v28 = vpop.eup %148  ;;  %v54_v29 = vadd.f32 1e-05, %v52_v27 }
  0xfd   :  { %v56_v30 = vmul.f32 %v149_v28, %v53_v25  ;;  %vm62_vm2 = vweird.f32 %v149_v28 }
  0xfe   :  { %150 = vrsqrt.f32 %v54_v29  ;;  %vm63_vm4 = vmor %vm61_vm3, %vm62_vm2  ;;  %vm71_vm6 = vweird.f32 %v54_v29 }
  0xff   :  { %v57_v31 = vmul.f32 %v149_v28, %v56_v30 }
 0x101   :  { %v58_v32 = vmul.f32 0.5, %v57_v31 }
 0x103   :  { %v59_v33 = vsub.f32 1.5, %v58_v32 }
 0x104   :  { %v151_v34 = vpop.eup %150 }
 0x105   :  { %v60_v35 = vmul.f32 %v149_v28, %v59_v33  ;;  %v66_v36 = vmul.f32 %v151_v34, %v54_v29  ;;  %vm72_vm5 = vweird.f32 %v151_v34 }
 0x106   :  { %vm73_vm7 = vmor %vm71_vm6, %vm72_vm5 }
 0x107   :  { %v67_v37 = vmul.f32 %v151_v34, %v66_v36  ;;  %v64_v38 = vsel %vm63_vm4, %v149_v28, %v60_v35 }
 0x108   :  { %v75_v41 = vmul.f32 %v64_v38, %v41_v13 }
 0x109   :  { %v68_v39 = vmul.f32 0.5, %v67_v37 }
 0x10a   :  { %v80_v46 = vmul.f32 %v143_v42, %v75_v41 }
 0x10b   :  { %v69_v40 = vsub.f32 1.5, %v68_v39 }
 0x10c   :  { %v85_v49 = vadd.f32 %v144_v47, %v80_v46 }
 0x10d   :  { %v70_v43 = vmul.f32 %v151_v34, %v69_v40 }
 0x10f   :  { %v74_v44 = vsel %vm73_vm7, %v151_v34, %v70_v43 }
 0x110   :  { %v76_v45 = vmul.f32 %v74_v44, %v42_v18 }
 0x112   :  { %v81_v48 = vmul.f32 %v143_v42, %v76_v45 }
 0x114   :  { %v86_v50 = vadd.f32 %v144_v47, %v81_v48 }
 0x116   :  { %v87_v51 = vpack.c.bf16 %v86_v50, %v85_v49 }
 0x118   :  { %139 = vmatmul.msk.bf16.vlgmr.msra.gmra.mxu0 %vm25_vm0, %v87_v51 }
 0x195   :  { %v120_v53 = vpop.f32.mrf.mxu0 }
 0x196   :  { %v121_v54 = vadd.f32 %v145_v52, %v120_v53 }
 0x198   :  { %125 = vst [vmem:[%s220_s5] sm:$0xff] %v121_v54 }
 0x19d   :  { %v122_v55 = vpop.f32.mrf.mxu0 }
 0x19e   :  { %v123_v56 = vadd.f32 %v145_v52, %v122_v55 }
 0x1a0   :  { %126 = vst [vmem:[%s220_s5 + $0x8] sm:$0xff] %v123_v56 }

// kernel: transformer_forward.5
= control target key start
LH: loop header
LB: loop body
LE: loop exit
PB: predicated region body
PF: predicated region fallthrough
CT: control target
= control target key end

     0   :  { %s1814_s24 = smov 0   ;;  %s2056_s0 = inlined_call_operand.vmem [shape: f32[2,8,32], index: 0, kind: input, shape index: {}, may-alias: {0,17}]   ;;  %s2057_s1 = inlined_call_operand.vmem [shape: bf16[4,32,8], index: 1, kind: input, shape index: {}]   ;;  %s2058_s2 = inlined_call_operand.vmem [shape: bf16[4,32,8], index: 2, kind: input, shape index: {}]   ;;  %s2059_s3 = inlined_call_operand.vmem [shape: bf16[4,32,8], index: 3, kind: input, shape index: {}]   ;;  %s2060_s4 = inlined_call_operand.vmem [shape: f32[4,1,8], index: 4, kind: input, shape index: {}]   ;;  %s2061_s5 = inlined_call_operand.vmem [shape: f32[4,1,8], index: 5, kind: input, shape index: {}]   ;;  %s2062_s6 = inlined_call_operand.vmem [shape: f32[4,1,8], index: 6, kind: input, shape index: {}]   ;;  %s2063_s7 = inlined_call_operand.vmem [shape: bf16[4,8,32], index: 7, kind: input, shape index: {}]   ;;  %s2064_s8 = inlined_call_operand.vmem [shape: f32[1,32], index: 8, kind: input, shape index: {}]   ;;  %s2065_s9 = inlined_call_operand.vmem [shape: f32[1,32], index: 9, kind: input, shape index: {}]   ;;  %s2066_s10 = inlined_call_operand.vmem [shape: f32[1,32], index: 10, kind: input, shape index: {}]   ;;  %s2067_s11 = inlined_call_operand.vmem [shape: bf16[32,64], index: 11, kind: input, shape index: {}]   ;;  %s2068_s12 = inlined_call_operand.vmem [shape: f32[1,64], index: 12, kind: input, shape index: {}]   ;;  %s2069_s13 = inlined_call_operand.vmem [shape: bf16[64,32], index: 13, kind: input, shape index: {}]   ;;  %s2070_s14 = inlined_call_operand.vmem [shape: f32[1,32], index: 14, kind: input, shape index: {}]   ;;  %s2071_s15 = inlined_call_operand.vmem [shape: f32[1,32], index: 15, kind: input, shape index: {}]   ;;  %s2072_s16 = inlined_call_operand.vmem [shape: f32[1,32], index: 16, kind: input, shape index: {}]   ;;  %s2073_s17 = inlined_call_operand.vmem [shape: f32[2,8,32], index: 17, kind: output, shape index: {}, may-alias: {0,17}]  }
   0x1   :  { %2076 = sst [smem:[#allocation3_spill]] %s2056_s0 }
   0x2   :  { %2077 = sst [smem:[#allocation4_spill]] %s2057_s1 }
   0x3 LB: > { %2078 = sst [smem:[#allocation2_spill]] %s1721_s24  ;;  %s1480_s25 = sadd.s32 4294967295, %s1721_s24   ;;  %s1721_s24 = sphi %s1814_s24, %s27_s24  }
   0x4   : > { %p1484_p0 = scmp.ge.s32.totalorder %s1721_s24, 1  ;;  %p486_p1 = scmp.lt.s32.totalorder %s1721_s24, 3 }
   0x6   : > { %p487_p2 = pnand %p1484_p0, %p486_p1 }
   0x7   : > { %s2079_s28 = sld [smem:[#allocation4_spill]] (!%p487_p2)  ;;  %p536_p3 = scmp.lt.s32.totalorder (!%p487_p2), %s1480_s25, 1 }
   0x8   : > { %490 = sbr.rel (%p487_p2) target bundleno = 1653 (0x675), region = 88  ;;  %s2080_s23 = sld [smem:[#allocation3_spill]] (!%p487_p2) }
   0xd   : > { %v1636_v0 = vld [vmem:[%s2079_s28 + $0x8] sm:$0xff]  ;;  %v1638_v1 = vld [vmem:[%s2079_s28 + $0x18] sm:$0xff]  ;;  %v1635_v4 = vld [vmem:[%s2079_s28] sm:$0xff]  ;;  %s2083_s25 = smov (!%p536_p3, %s1480_s25), 1  ;;  %vm591_vm0 = vcmask 261120   ;;  %vm959_vm1 = vcmask 64512  }
   0xe   : > { %v1640_v2 = vld [vmem:[%s2079_s28 + $0x28] sm:$0xff]  ;;  %v1642_v3 = vld [vmem:[%s2079_s28 + $0x38] sm:$0xff]  ;;  %601 = vmatpush.bf16.msra.mxu0 %v1636_v0  ;;  %626 = vmatpush.bf16.msra.mxu1 %v1638_v1  ;;  %v1637_v5 = vld [vmem:[%s2079_s28 + $0x10] sm:$0xff]  ;;  %s1485_s30 = sshll.u32 %s2083_s25, 3  ;;  %vm1091_vm2 = vcmask 1043456   ;;  %vm1376_vm7 = vcmask 523264  }
   0xf   : > { %651 = vmatpush.bf16.msra.mxu2 %v1640_v2  ;;  %676 = vmatpush.bf16.msra.mxu3 %v1642_v3  ;;  %v1639_v6 = vld [vmem:[%s2079_s28 + $0x20] sm:$0xff]  ;;  %v1641_v7 = vld [vmem:[%s2079_s28 + $0x30] sm:$0xff]  ;;  %v1644_v8 = vld [vmem:[%s2058_s2 + $0x8] sm:$0xff]  ;;  %s539_s24 = scalar_lea.vmem %s2080_s23, %s1485_s30  ;;  %s543_s18 = scalar_lea.vmem %s2073_s17, %s1485_s30 }
  0x10   : > { %v1646_v9 = vld [vmem:[%s2058_s2 + $0x18] sm:$0xff]  ;;  %v1648_v10 = vld [vmem:[%s2058_s2 + $0x28] sm:$0xff]  ;;  %v1866_v12 = vld [vmem:[%s539_s24] sm:$0xff] }
  0x11   : > { %v1650_v11 = vld [vmem:[%s2058_s2 + $0x38] sm:$0xff]  ;;  %v1643_v13 = vld [vmem:[%s2058_s2] sm:$0xff]  ;;  %v1645_v14 = vld [vmem:[%s2058_s2 + $0x10] sm:$0xff]  ;;  %v546_v15 = vpack.c.bf16 %v1866_v12, %v1866_v12 }
  0x12   : > { %602 = vmatpush.bf16.msra.mxu0 %v1635_v4  ;;  %627 = vmatpush.bf16.msra.mxu1 %v1637_v5  ;;  %v1647_v16 = vld [vmem:[%s2058_s2 + $0x20] sm:$0xff]  ;;  %v1649_v17 = vld [vmem:[%s2058_s2 + $0x30] sm:$0xff]  ;;  %v1656_v18 = vld [vmem:[%s2059_s3 + $0x28] sm:$0xff] }
  0x13   : > { %652 = vmatpush.bf16.msra.mxu2 %v1639_v6  ;;  %677 = vmatpush.bf16.msra.mxu3 %v1641_v7  ;;  %v1652_v19 = vld [vmem:[%s2059_s3 + $0x8] sm:$0xff]  ;;  %v1654_v20 = vld [vmem:[%s2059_s3 + $0x18] sm:$0xff]  ;;  %v1655_v21 = vld [vmem:[%s2059_s3 + $0x20] sm:$0xff] }
  0x14   : > { %v1651_v22 = vld [vmem:[%s2059_s3] sm:$0xff]  ;;  %v1653_v23 = vld [vmem:[%s2059_s3 + $0x10] sm:$0xff]  ;;  %v1658_v24 = vld [vmem:[%s2059_s3 + $0x38] sm:$0xff] }
  0x15   : > { %1495 = vmatmul.msk.bf16.vlgmr.msra.gmra.mxu0 %vm591_vm0, %v546_v15  ;;  %1504 = vmatmul.msk.bf16.vlgmr.msra.gmra.mxu1 %vm591_vm0, %v546_v15  ;;  %v1657_v25 = vld [vmem:[%s2059_s3 + $0x30] sm:$0xff]  ;;  %v1675_v32 = vld [vmem:[%s2060_s4 + $0x1] ss:$0 sm:$0xff]  ;;  %v1678_v33 = vld [vmem:[%s2061_s5] ss:$0 sm:$0xff] }
  0x16   : > { %733 = vmatpush.bf16.msrb.mxu0 %v1644_v8  ;;  %758 = vmatpush.bf16.msrb.mxu1 %v1646_v9  ;;  %v1679_v34 = vld [vmem:[%s2061_s5 + $0x1] ss:$0 sm:$0xff]  ;;  %v1674_v37 = vld [vmem:[%s2060_s4] ss:$0 sm:$0xff]  ;;  %v1680_v46 = vld [vmem:[%s2061_s5 + $0x2] ss:$0 sm:$0xff] }
  0x17   : > { %1513 = vmatmul.msk.bf16.vlgmr.msra.gmra.mxu2 %vm591_vm0, %v546_v15  ;;  %1522 = vmatmul.msk.bf16.vlgmr.msra.gmra.mxu3 %vm591_vm0, %v546_v15  ;;  %v1681_v47 = vld [vmem:[%s2061_s5 + $0x3] ss:$0 sm:$0xff]  ;;  %v1676_v51 = vld [vmem:[%s2060_s4 + $0x2] ss:$0 sm:$0xff] }
  0x18   : > { %783 = vmatpush.bf16.msrb.mxu2 %v1648_v10  ;;  %808 = vmatpush.bf16.msrb.mxu3 %v1650_v11  ;;  %v1677_v52 = vld [vmem:[%s2060_s4 + $0x3] ss:$0 sm:$0xff]  ;;  %v1682_v10 = vld [vmem:[%s2062_s6] ss:$0 sm:$0xff]  ;;  %v1683_v11 = vld [vmem:[%s2062_s6 + $0x1] ss:$0 sm:$0xff] }
  0x1a   : > { %734 = vmatpush.bf16.msrb.mxu0 %v1643_v13  ;;  %759 = vmatpush.bf16.msrb.mxu1 %v1645_v14 }
  0x1c   : > { %784 = vmatpush.bf16.msrb.mxu2 %v1647_v16  ;;  %809 = vmatpush.bf16.msrb.mxu3 %v1649_v17  ;;  %v1684_v16 = vld [vmem:[%s2062_s6 + $0x2] ss:$0 sm:$0xff] }
  0x1e   : > { %865 = vmatpush.bf16.msra.mxu0 %v1652_v19  ;;  %890 = vmatpush.bf16.msra.mxu1 %v1654_v20 }
  0x20   : > { %915 = vmatpush.bf16.msra.mxu2 %v1656_v18  ;;  %940 = vmatpush.bf16.msra.mxu3 %v1658_v24 }
  0x22   : > { %866 = vmatpush.bf16.msra.mxu0 %v1651_v22  ;;  %891 = vmatpush.bf16.msra.mxu1 %v1653_v23 }
  0x24   : > { %916 = vmatpush.bf16.msra.mxu2 %v1655_v21  ;;  %941 = vmatpush.bf16.msra.mxu3 %v1657_v25 }
  0x25   : > { %1531 = vmatmul.msk.bf16.vlgmr.msrb.gmra.mxu0 %vm591_vm0, %v546_v15  ;;  %1540 = vmatmul.msk.bf16.vlgmr.msrb.gmra.mxu1 %vm591_vm0, %v546_v15 }
  0x27   : > { %1549 = vmatmul.msk.bf16.vlgmr.msrb.gmra.mxu2 %vm591_vm0, %v546_v15  ;;  %1558 = vmatmul.msk.bf16.vlgmr.msrb.gmra.mxu3 %vm591_vm0, %v546_v15 }
  0x35   : > { %1567 = vmatmul.msk.bf16.vlgmr.msra.gmra.mxu0 %vm591_vm0, %v546_v15  ;;  %1576 = vmatmul.msk.bf16.vlgmr.msra.gmra.mxu1 %vm591_vm0, %v546_v15 }
  0x37   : > { %1585 = vmatmul.msk.bf16.vlgmr.msra.gmra.mxu2 %vm591_vm0, %v546_v15  ;;  %1594 = vmatmul.msk.bf16.vlgmr.msra.gmra.mxu3 %vm591_vm0, %v546_v15 }
  0x92   : > { %v604_v26 = vpop.f32.mrf.mxu0  ;;  %v629_v27 = vpop.f32.mrf.mxu1 }
  0x93   : > { %v630_v40 = vadd.f32 %v1675_v32, %v629_v27  ;;  %v605_v45 = vadd.f32 %v1674_v37, %v604_v26 }
  0x95   : > { %v948_v48 = vmul.f32 0.35355338, %v630_v40  ;;  %v947_v55 = vmul.f32 0.35355338, %v605_v45 }
  0x97   : > { %v952_v60 = vpack.c.bf16 %v948_v48, %v948_v48  ;;  %v951_v1 = vpack.c.bf16 %v947_v55, %v947_v55 }
  0x9a   : > { %v654_v28 = vpop.f32.mrf.mxu2  ;;  %v679_v29 = vpop.f32.mrf.mxu3 }
  0x9b   : > { %v606_v30 = vpop.f32.mrf.mxu0  ;;  %v631_v31 = vpop.f32.mrf.mxu1  ;;  %v655_v61 = vadd.f32 %v1676_v51, %v654_v28  ;;  %v680_v62 = vadd.f32 %v1677_v52, %v679_v29  ;;  %v1685_v28 = vld [vmem:[%s2062_s6 + $0x3] ss:$0 sm:$0xff] }
  0x9d   : > { %v949_v4 = vmul.f32 0.35355338, %v655_v61  ;;  %v950_v5 = vmul.f32 0.35355338, %v680_v62 }
  0x9f   : > { %v953_v8 = vpack.c.bf16 %v949_v4, %v949_v4  ;;  %v954_v9 = vpack.c.bf16 %v950_v5, %v950_v5 }
  0xa2   : > { %v656_v35 = vpop.f32.mrf.mxu2  ;;  %v681_v36 = vpop.f32.mrf.mxu3 }
  0xa3   : > { %v736_v38 = vpop.f32.mrf.mxu0  ;;  %v761_v39 = vpop.f32.mrf.mxu1 }
  0xa4   : > { %v737_v41 = vadd.f32 %v1678_v33, %v736_v38  ;;  %v762_v42 = vadd.f32 %v1679_v34, %v761_v39 }
  0xa6   : > { %v955_v43 = vpack.c.bf16 %v737_v41, %v737_v41  ;;  %v956_v44 = vpack.c.bf16 %v762_v42, %v762_v42 }
  0xa8   : > { %v964_v49 = vsel %vm959_vm1, %v955_v43, 0  ;;  %v983_v50 = vsel %vm959_vm1, %v956_v44, 0 }
  0xa9   : > { %973 = vmatpush.bf16.xpose.msrb.mxu0 %v964_v49  ;;  %992 = vmatpush.bf16.xpose.msrb.mxu1 %v983_v50 }
  0xaa   : > { %v786_v53 = vpop.f32.mrf.mxu2  ;;  %v811_v54 = vpop.f32.mrf.mxu3 }
  0xab   : > { %v787_v56 = vadd.f32 %v1680_v46, %v786_v53  ;;  %v812_v57 = vadd.f32 %v1681_v47, %v811_v54  ;;  %v738_v58 = vpop.f32.mrf.mxu0  ;;  %v763_v59 = vpop.f32.mrf.mxu1 }
  0xad   : > { %v957_v63 = vpack.c.bf16 %v787_v56, %v787_v56  ;;  %v958_v0 = vpack.c.bf16 %v812_v57, %v812_v57 }
  0xaf   : > { %v1002_v2 = vsel %vm959_vm1, %v957_v63, 0  ;;  %v1021_v3 = vsel %vm959_vm1, %v958_v0, 0 }
  0xb0   : > { %1011 = vmatpush.bf16.xpose.msrb.mxu2 %v1002_v2  ;;  %1030 = vmatpush.bf16.xpose.msrb.mxu3 %v1021_v3 }
  0xb1   : > { %1595 = vmatmul.msk.bf16.vlgmr.msrb.gmra.mxu0 %vm959_vm1, %v951_v1  ;;  %1596 = vmatmul.msk.bf16.vlgmr.msrb.gmra.mxu1 %vm959_vm1, %v952_v60 }
  0xb2   : > { %v788_v6 = vpop.f32.mrf.mxu2  ;;  %v813_v7 = vpop.f32.mrf.mxu3 }
  0xb3   : > { %v868_v13 = vpop.f32.mrf.mxu0  ;;  %v893_v15 = vpop.f32.mrf.mxu1 }
  0xb4   : > { %v869_v14 = vadd.f32 %v1682_v10, %v868_v13  ;;  %v894_v17 = vadd.f32 %v1683_v11, %v893_v15 }
  0xb6   : > { %v1084_v18 = vpack.c.bf16 %v869_v14, %v869_v14  ;;  %v1085_v19 = vpack.c.bf16 %v894_v17, %v894_v17 }
  0xb7   : > { %1597 = vmatmul.msk.bf16.vlgmr.msrb.gmra.mxu2 %vm959_vm1, %v953_v8  ;;  %1598 = vmatmul.msk.bf16.vlgmr.msrb.gmra.mxu3 %vm959_vm1, %v954_v9 }
  0xb8   : > { %v1093_v21 = vsel %vm1091_vm2, %v1084_v18, 0  ;;  %v1112_v23 = vsel %vm1091_vm2, %v1085_v19, 0 }
  0xb9   : > { %1102 = vmatpush.bf16.msra.mxu0 %v1093_v21  ;;  %1121 = vmatpush.bf16.msra.mxu1 %v1112_v23 }
  0xba   : > { %v918_v20 = vpop.f32.mrf.mxu2  ;;  %v943_v29 = vpop.f32.mrf.mxu3 }
  0xbb   : > { %v919_v22 = vadd.f32 %v1684_v16, %v918_v20  ;;  %v870_v25 = vpop.f32.mrf.mxu0  ;;  %v895_v26 = vpop.f32.mrf.mxu1  ;;  %v944_v31 = vadd.f32 %v1685_v28, %v943_v29  ;;  %v1169_v20 = vld [vmem:[%s2063_s7] sm:$0xf] }
  0xbc   : > { %v1177_v21 = vsel %vm1091_vm2, %v1169_v20, 0  ;;  %v1172_v26 = vld [vmem:[%s2063_s7 + $0xc] sm:$0xf]  ;;  %v1687_v20 = vld [vmem:[%s2065_s9] ss:$0 sm:$0xff] }
  0xbd   : > { %v1086_v24 = vpack.c.bf16 %v919_v22, %v919_v22  ;;  %v1087_v32 = vpack.c.bf16 %v944_v31, %v944_v31  ;;  %1186 = vmatpush.bf16.msrb.mxu0 %v1177_v21  ;;  %v1170_v22 = vld [vmem:[%s2063_s7 + $0x4] sm:$0xf] }
  0xbe   : > { %v1196_v23 = vsel %vm1091_vm2, %v1170_v22, 0  ;;  %v1688_v22 = vld [vmem:[%s2066_s10] ss:$0 sm:$0xff] }
  0xbf   : > { %v1131_v27 = vsel %vm1091_vm2, %v1086_v24, 0  ;;  %v1150_v33 = vsel %vm1091_vm2, %v1087_v32, 0  ;;  %1205 = vmatpush.bf16.msrb.mxu1 %v1196_v23  ;;  %v1171_v24 = vld [vmem:[%s2063_s7 + $0x8] sm:$0xf] }
  0xc0   : > { %1140 = vmatpush.bf16.msra.mxu2 %v1131_v27  ;;  %1159 = vmatpush.bf16.msra.mxu3 %v1150_v33  ;;  %v1215_v25 = vsel %vm1091_vm2, %v1171_v24, 0  ;;  %v1234_v27 = vsel %vm1091_vm2, %v1172_v26, 0 }
  0xc2   : > { %v920_v30 = vpop.f32.mrf.mxu2  ;;  %v945_v34 = vpop.f32.mrf.mxu3 }
  0xc4   : > { %1224 = vmatpush.bf16.msrb.mxu2 %v1215_v25  ;;  %1243 = vmatpush.bf16.msrb.mxu3 %v1234_v27  ;;  %v1662_v27 = vld [vmem:[%s2069_s13 + $0x8] sm:$0xff] }
 0x12e   : > { %v975_v35 = vpop.f32.mrf.mxu0  ;;  %v994_v36 = vpop.f32.mrf.mxu1 }
 0x12f   : > { %v1036_v37 = vsel %vm959_vm1, %v975_v35, -inf  ;;  %v1039_v40 = vsel %vm959_vm1, %v994_v36, -inf }
 0x130   : > { %1037 = vmax.xlane.f32.xlu1 %v1036_v37 }
 0x136   : > { %v977_v38 = vpop.f32.mrf.mxu0  ;;  %v996_v39 = vpop.f32.mrf.mxu1 }
 0x138   : > { %1040 = vmax.xlane.f32.xlu1 %v1039_v40 }
 0x13a   : > { %v1013_v41 = vpop.f32.mrf.mxu2  ;;  %v1032_v42 = vpop.f32.mrf.mxu3 }
 0x13b   : > { %v1042_v43 = vsel %vm959_vm1, %v1013_v41, -inf  ;;  %v1045_v46 = vsel %vm959_vm1, %v1032_v42, -inf }
 0x13c   : > { %1043 = vmax.xlane.f32.xlu0 %v1042_v43 }
 0x142   : > { %v1015_v44 = vpop.f32.mrf.mxu2  ;;  %v1034_v45 = vpop.f32.mrf.mxu3 }
 0x144   : > { %1046 = vmax.xlane.f32.xlu0 %v1045_v46 }
 0x1a3   : > { %v1038_v47 = vpop.xlane.xlu1 %1037 }
 0x1a4   : > { %v1048_v48 = vsub.f32 %v975_v35, %v1038_v47 }
 0x1a6   : > { %v1052_v49 = vmul.f32 1.442695, %v1048_v48 }
 0x1a8   : > { %1693 = vpow2.f32 %v1052_v49 }
 0x1ab   : > { %v1041_v50 = vpop.xlane.xlu1 %1040 }
 0x1ac   : > { %v1049_v51 = vsub.f32 %v994_v36, %v1041_v50 }
 0x1ae   : > { %v1694_v52 = vpop.eup %1693  ;;  %v1054_v53 = vmul.f32 1.442695, %v1049_v51 }
 0x1af   : > { %v1044_v54 = vpop.xlane.xlu0 %1043  ;;  %v1060_v55 = vsel %vm959_vm1, %v1694_v52, 0.0 }
 0x1b0   : > { %1695 = vpow2.f32 %v1054_v53  ;;  %v1050_v56 = vsub.f32 %v1013_v41, %v1044_v54  ;;  %1061 = vadd.xlane.f32.xlu0 %v1060_v55 }
 0x1b2   : > { %v1056_v57 = vmul.f32 1.442695, %v1050_v56 }
 0x1b4   : > { %1697 = vpow2.f32 %v1056_v57 }
 0x1b6   : > { %v1696_v58 = vpop.eup %1695 }
 0x1b7   : > { %v1047_v59 = vpop.xlane.xlu0 %1046  ;;  %v1063_v60 = vsel %vm959_vm1, %v1696_v58, 0.0 }
 0x1b8   : > { %v1051_v61 = vsub.f32 %v1032_v42, %v1047_v59  ;;  %1064 = vadd.xlane.f32.xlu1 %v1063_v60  ;;  %v1723_v59 = vmov 32.0  }
 0x1ba   : > { %v1698_v62 = vpop.eup %1697  ;;  %v1058_v63 = vmul.f32 1.442695, %v1051_v61 }
 0x1bb   : > { %v1066_v0 = vsel %vm959_vm1, %v1698_v62, 0.0 }
 0x1bc   : > { %1699 = vpow2.f32 %v1058_v63  ;;  %1067 = vadd.xlane.f32.xlu2 %v1066_v0 }
 0x1c2   : > { %v1700_v1 = vpop.eup %1699 }
 0x1c3   : > { %v1069_v2 = vsel %vm959_vm1, %v1700_v1, 0.0 }
 0x1c4   : > { %1070 = vadd.xlane.f32.xlu2 %v1069_v2 }
 0x223   : > { %v1062_v3 = vpop.xlane.xlu0 %1061 }
 0x224   : > { %1701 = vrcp.f32 %v1062_v3 }
 0x22a   : > { %v1702_v4 = vpop.eup %1701 }
 0x22b   : > { %v1076_v5 = vmul.f32 %v1702_v4, %v1694_v52  ;;  %v1065_v6 = vpop.xlane.xlu1 %1064  ;;  %v1686_v52 = vld [vmem:[%s2064_s8] ss:$0 sm:$0xff] }
 0x22c   : > { %1703 = vrcp.f32 %v1065_v6 }
 0x22d   : > { %v1080_v7 = vpack.c.bf16 %v1076_v5, %v1076_v5 }
 0x22f   : > { %v1068_v8 = vpop.xlane.xlu2 %1067  ;;  %1599 = vmatmul.msk.bf16.vlgmr.msra.gmra.mxu0 %vm959_vm1, %v1080_v7  ;;  %v1659_v7 = vld [vmem:[%s2067_s11] sm:$0xff] }
 0x230   : > { %1705 = vrcp.f32 %v1068_v8  ;;  %v1664_v8 = vld [vmem:[%s2069_s13 + $0x18] sm:$0xff] }
 0x232   : > { %v1704_v9 = vpop.eup %1703 }
 0x233   : > { %v1077_v10 = vmul.f32 %v1704_v9, %v1696_v58 }
 0x235   : > { %v1081_v11 = vpack.c.bf16 %v1077_v10, %v1077_v10 }
 0x236   : > { %v1706_v13 = vpop.eup %1705 }
 0x237   : > { %v1078_v14 = vmul.f32 %v1706_v13, %v1698_v62  ;;  %v1071_v15 = vpop.xlane.xlu2 %1070  ;;  %1600 = vmatmul.msk.bf16.vlgmr.msra.gmra.mxu1 %vm959_vm1, %v1081_v11  ;;  %v1663_v11 = vld [vmem:[%s2069_s13 + $0x10] sm:$0xff] }
 0x238   : > { %1707 = vrcp.f32 %v1071_v15  ;;  %1384 = vmatpush.bf16.msra.mxu1 %v1664_v8 }
 0x239   : > { %v1082_v16 = vpack.c.bf16 %v1078_v14, %v1078_v14  ;;  %1709 = vrcp.f32 %v1723_v59 }
 0x23b   : > { %1601 = vmatmul.msk.bf16.vlgmr.msra.gmra.mxu2 %vm959_vm1, %v1082_v16 }
 0x23c   : > { %1385 = vmatpush.bf16.msra.mxu1 %v1663_v11 }
 0x23e   : > { %v1708_v17 = vpop.eup %1707 }
 0x23f   : > { %v1079_v18 = vmul.f32 %v1708_v17, %v1700_v1  ;;  %v1710_v60 = vpop.eup %1709 }
 0x240   : > { %v1268_v61 = vmul.f32 32.0, %v1710_v60  ;;  %vm1272_vm3 = vweird.f32 %v1710_v60  ;;  %1386 = vmatpush.bf16.msra.mxu1 %v1662_v27 }
 0x241   : > { %v1083_v19 = vpack.c.bf16 %v1079_v18, %v1079_v18 }
 0x242   : > { %v1269_v62 = vsub.f32 1.0, %v1268_v61 }
 0x243   : > { %1602 = vmatmul.msk.bf16.vlgmr.msra.gmra.mxu3 %vm959_vm1, %v1083_v19 }
 0x244   : > { %v1270_v63 = vmul.f32 %v1710_v60, %v1269_v62 }
 0x246   : > { %v1271_v0 = vadd.f32 %v1710_v60, %v1270_v63 }
 0x248   : > { %v1273_v1 = vsel %vm1272_vm3, %v1710_v60, %v1271_v0 }
 0x2ac   : > { %v1104_v28 = vpop.f32.mrf.mxu0 }
 0x2ad   : > { %v1165_v29 = vpack.c.bf16 %v1104_v28, %v1104_v28  ;;  %v1661_v28 = vld [vmem:[%s2069_s13] sm:$0xff] }
 0x2ae   : > { %1387 = vmatpush.bf16.msra.mxu1 %v1661_v28 }
 0x2af   : > { %1603 = vmatmul.msk.bf16.vlgmr.msrb.gmra.mxu0 %vm959_vm1, %v1165_v29  ;;  %v1689_v29 = vld [vmem:[%s2068_s12] ss:$0 sm:$0xff] }
 0x2b4   : > { %v1106_v30 = vpop.f32.mrf.mxu0  ;;  %v1123_v31 = vpop.f32.mrf.mxu1 }
 0x2b5   : > { %v1166_v32 = vpack.c.bf16 %v1123_v31, %v1123_v31 }
 0x2b7   : > { %1604 = vmatmul.msk.bf16.vlgmr.msrb.gmra.mxu1 %vm959_vm1, %v1166_v32 }
 0x2bc   : > { %v1125_v33 = vpop.f32.mrf.mxu1 }
 0x2be   : > { %v1142_v34 = vpop.f32.mrf.mxu2 }
 0x2bf   : > { %v1167_v35 = vpack.c.bf16 %v1142_v34, %v1142_v34 }
 0x2c1   : > { %1605 = vmatmul.msk.bf16.vlgmr.msrb.gmra.mxu2 %vm959_vm1, %v1167_v35  ;;  %v1690_v35 = vld [vmem:[%s2070_s14] ss:$0 sm:$0xff] }
 0x2c6   : > { %v1144_v36 = vpop.f32.mrf.mxu2  ;;  %v1161_v37 = vpop.f32.mrf.mxu3 }
 0x2c7   : > { %v1168_v38 = vpack.c.bf16 %v1161_v37, %v1161_v37 }
 0x2c9   : > { %1606 = vmatmul.msk.bf16.vlgmr.msrb.gmra.mxu3 %vm959_vm1, %v1168_v38 }
 0x2ce   : > { %v1163_v39 = vpop.f32.mrf.mxu3 }
 0x32c   : > { %v1188_v40 = vpop.f32.mrf.mxu0 }
 0x32d   : > { %v1249_v46 = vsel %vm591_vm0, %v1188_v40, 0.0 }
 0x334   : > { %v1190_v41 = vpop.f32.mrf.mxu0  ;;  %v1207_v42 = vpop.f32.mrf.mxu1 }
 0x335   : > { %v1250_v45 = vsel %vm591_vm0, %v1207_v42, 0.0 }
 0x336   : > { %v1251_v48 = vadd.f32 %v1250_v45, %v1249_v46 }
 0x33c   : > { %v1209_v43 = vpop.f32.mrf.mxu1 }
 0x344   : > { %v1226_v44 = vpop.f32.mrf.mxu2 }
 0x345   : > { %v1252_v47 = vsel %vm591_vm0, %v1226_v44, 0.0 }
 0x346   : > { %v1253_v49 = vadd.f32 %v1252_v47, %v1251_v48 }
 0x34c   : > { %v1228_v50 = vpop.f32.mrf.mxu2  ;;  %v1245_v51 = vpop.f32.mrf.mxu3 }
 0x34d   : > { %v1254_v53 = vsel %vm591_vm0, %v1245_v51, 0.0 }
 0x34e   : > { %v1255_v54 = vadd.f32 %v1254_v53, %v1253_v49 }
 0x350   : > { %v1260_v55 = vadd.f32 %v1686_v52, %v1255_v54 }
 0x352   : > { %v1261_v56 = vadd.f32 %v1260_v55, %v1866_v12  ;;  %v1660_v12 = vld [vmem:[%s2067_s11 + $0x8] sm:$0xff]  ;;  %v1691_v55 = vld [vmem:[%s2071_s15] ss:$0 sm:$0xff] }
 0x353   : > { %1331 = vmatpush.bf16.msra.mxu0 %v1660_v12 }
 0x354   : > { %v1247_v57 = vpop.f32.mrf.mxu3  ;;  %v1264_v58 = vsel %vm591_vm0, %v1261_v56, 0.0 }
 0x355   : > { %1265 = vadd.xlane.f32.xlu2 %v1264_v58  ;;  %v1692_v57 = vld [vmem:[%s2072_s16] ss:$0 sm:$0xff] }
 0x357   : > { %1332 = vmatpush.bf16.msra.mxu0 %v1659_v7 }
 0x3c8   : > { %v1266_v2 = vpop.xlane.xlu2 %1265 }
 0x3c9   : > { %v1274_v3 = vmul.f32 %v1273_v1, %v1266_v2 }
 0x3cb   : > { %v1275_v4 = vsub.f32 %v1261_v56, %v1274_v3 }
 0x3cd   : > { %v1276_v5 = vmul.f32 %v1275_v4, %v1275_v4 }
 0x3cf   : > { %v1277_v6 = vsel %vm591_vm0, %v1276_v5, 0.0 }
 0x3d0   : > { %1278 = vadd.xlane.f32.xlu0 %v1277_v6 }
 0x443   : > { %v1279_v9 = vpop.xlane.xlu0 %1278 }
 0x444   : > { %v1280_v10 = vmul.f32 %v1279_v9, %v1273_v1 }
 0x446   : > { %v1281_v13 = vadd.f32 1e-05, %v1280_v10 }
 0x448   : > { %1711 = vrsqrt.f32 %v1281_v13  ;;  %vm1288_vm5 = vweird.f32 %v1281_v13 }
 0x44e   : > { %v1712_v14 = vpop.eup %1711 }
 0x44f   : > { %v1283_v15 = vmul.f32 %v1712_v14, %v1281_v13  ;;  %vm1289_vm4 = vweird.f32 %v1712_v14 }
 0x450   : > { %vm1290_vm6 = vmor %vm1288_vm5, %vm1289_vm4 }
 0x451   : > { %v1284_v16 = vmul.f32 %v1712_v14, %v1283_v15 }
 0x453   : > { %v1285_v17 = vmul.f32 0.5, %v1284_v16 }
 0x455   : > { %v1286_v18 = vsub.f32 1.5, %v1285_v17 }
 0x457   : > { %v1287_v19 = vmul.f32 %v1712_v14, %v1286_v18 }
 0x459   : > { %v1291_v21 = vsel %vm1290_vm6, %v1712_v14, %v1287_v19 }
 0x45a   : > { %v1292_v23 = vmul.f32 %v1291_v21, %v1275_v4 }
 0x45c   : > { %v1296_v24 = vmul.f32 %v1687_v20, %v1292_v23 }
 0x45e   : > { %v1300_v25 = vadd.f32 %v1688_v22, %v1296_v24 }
 0x460   : > { %v1301_v26 = vpack.c.bf16 %v1300_v25, %v1300_v25 }
 0x462   : > { %1615 = vmatmul.msk.bf16.vlgmr.msra.gmra.mxu0 %vm591_vm0, %v1301_v26 }
 0x4df   : > { %v1334_v30 = vpop.f32.mrf.mxu0 }
 0x4e0   : > { %v1335_v31 = vadd.f32 %v1689_v29, %v1334_v30 }
 0x4e2   : > { %v1338_v32 = vmax.f32 %v1335_v31, 0.0 }
 0x4e4   : > { %v1339_v33 = vpack.c.bf16 %v1338_v32, %v1338_v32 }
 0x4e6   : > { %1632 = vmatmul.msk.bf16.vlgmr.msra.gmra.mxu1 %vm1376_vm7, %v1339_v33 }
 0x4e7   : > { %v1336_v34 = vpop.f32.mrf.mxu0 }
 0x563   : > { %v1389_v36 = vpop.f32.mrf.mxu1 }
 0x564   : > { %v1390_v37 = vadd.f32 %v1690_v35, %v1389_v36 }
 0x566   : > { %v1393_v38 = vadd.f32 %v1390_v37, %v1300_v25 }
 0x568   : > { %v1396_v39 = vsel %vm591_vm0, %v1393_v38, 0.0 }
 0x569   : > { %1397 = vadd.xlane.f32.xlu1 %v1396_v39 }
 0x56b   : > { %v1391_v40 = vpop.f32.mrf.mxu1 }
 0x5dc   : > { %v1398_v41 = vpop.xlane.xlu1 %1397 }
 0x5dd   : > { %v1399_v42 = vmul.f32 %v1398_v41, %v1273_v1 }
 0x5df   : > { %v1400_v43 = vsub.f32 %v1393_v38, %v1399_v42 }
 0x5e1   : > { %v1401_v44 = vmul.f32 %v1400_v43, %v1400_v43 }
 0x5e3   : > { %v1402_v45 = vsel %vm591_vm0, %v1401_v44, 0.0 }
 0x5e4   : > { %1403 = vadd.xlane.f32.xlu2 %v1402_v45 }
 0x657   : > { %v1404_v46 = vpop.xlane.xlu2 %1403 }
 0x658   : > { %v1405_v47 = vmul.f32 %v1404_v46, %v1273_v1 }
 0x65a   : > { %v1406_v48 = vadd.f32 1e-05, %v1405_v47 }
 0x65c   : > { %1713 = vrsqrt.f32 %v1406_v48  ;;  %vm1413_vm9 = vweird.f32 %v1406_v48 }
 0x662   : > { %v1714_v49 = vpop.eup %1713 }
 0x663   : > { %v1408_v50 = vmul.f32 %v1714_v49, %v1406_v48  ;;  %vm1414_vm8 = vweird.f32 %v1714_v49 }
 0x664   : > { %vm1415_vm10 = vmor %vm1413_vm9, %vm1414_vm8 }
 0x665   : > { %v1409_v51 = vmul.f32 %v1714_v49, %v1408_v50 }
 0x667   : > { %v1410_v52 = vmul.f32 0.5, %v1409_v51 }
 0x669   : > { %v1411_v53 = vsub.f32 1.5, %v1410_v52 }
 0x66b   : > { %v1412_v54 = vmul.f32 %v1714_v49, %v1411_v53 }
 0x66d   : > { %v1416_v56 = vsel %vm1415_vm10, %v1714_v49, %v1412_v54 }
 0x66e   : > { %v1417_v58 = vmul.f32 %v1416_v56, %v1400_v43 }
 0x670   : > { %v1421_v59 = vmul.f32 %v1691_v55, %v1417_v58 }
 0x672   : > { %v1425_v60 = vadd.f32 %v1692_v57, %v1421_v59 }
 0x674   : > { %1426 = vst.msk [vmem:[%s543_s18] sm:$0xff] %vm591_vm0, %v1425_v60 }
 0x675 PF: > { %s2081_s19 = sld [smem:[#allocation2_spill]] }
 0x67b   : > { %s27_s24 = sadd.s32 1, %s2081_s19  }
 0x67c   : > { %p24_p4 = scmp.ge.s32.totalorder %s27_s24, 4  }
 0x67e   :  { %26 = sbr.rel (!%p24_p4) target bundleno = 3 (0x3), region = 118 }

</bundles_post_ra>
